<compile_context>
chip_gen: v7x
topology: tpu7x:2x2x1
jax: 0.10.0
libtpu: 0.0.40
codegen_flags: <defaults>
</compile_context>

<pallas_src>
import numpy as np
import jax
import jax.numpy as jnp
from jax.experimental import pallas as pl
from jax.experimental.pallas import tpu as pltpu


def _round_up(v, m):
    return -(-v // m) * m


# ------------------------------------------------------------------ kernel ---
def _make_tse_kernel(hp_tile, kh, H, W):
    """Refs per grid step (n, h):
       x_ref : (C, hp_tile, kh, W)  one batch element, hp_tile pooled-row groups
       pw_ref: (W, Wp_pad)          width-pool matrix (1/col-count folded in)
       u_ref : (Wp_pad, W)          0/1 nearest-upsample matrix (kw repeat + :W crop)
       w1_ref: (Cr, C)   b1_ref: (Cr, 1)
       w2_ref: (C, Cr)   b2_ref: (C, 1)
       o_ref : (C, hp_tile, kh, W)
    """
    def kernel(x_ref, pw_ref, u_ref, w1_ref, b1_ref, w2_ref, b2_ref, o_ref):
        h_idx = pl.program_id(1)
        for i in range(hp_tile):                         # small static unroll
            x_hp = x_ref[:, i, :, :]                     # (C, kh, W)
            # --- squeeze: ceil-mode average pool ---------------------------
            xs = jnp.sum(x_hp, axis=1)                   # (C, W): sum over kh rows
            pooled = jnp.dot(xs, pw_ref[...],
                             preferred_element_type=jnp.float32)   # (C, Wp_pad)
            # valid-row count of this pooled row (ceil-mode boundary window);
            # clipped to >=1 so out-of-range rows of a partial tile stay finite
            # (their output is masked on write-back anyway).
            hp = h_idx * hp_tile + i
            nrows = jnp.clip(H - hp * kh, 1, kh).astype(jnp.float32)
            pooled = pooled * (1.0 / nrows)
            # --- excite: 1x1 conv -> relu -> 1x1 conv -> sigmoid -----------
            hmid = jnp.dot(w1_ref[...], pooled,
                           preferred_element_type=jnp.float32) + b1_ref[...]
            hmid = jnp.maximum(hmid, 0.0)                # (Cr, Wp_pad)
            s = jnp.dot(w2_ref[...], hmid,
                        preferred_element_type=jnp.float32) + b2_ref[...]
            s = jax.nn.sigmoid(s)                        # (C, Wp_pad)
            # --- nearest upsample along W, gate (reused for all kh rows) ---
            gate = jnp.dot(s, u_ref[...],
                           preferred_element_type=jnp.float32)     # (C, W)
            o_ref[:, i, :, :] = x_hp * gate[:, None, :]
    return kernel


# ----------------------------------------------------------------- wrapper ---
def _vmem_limit_bytes():
    cap = None
    try:
        info = pltpu.get_tpu_info()
        cap = getattr(info, "vmem_capacity_bytes", None)
    except Exception:
        cap = None
    if not cap:
        cap = 64 * 1024 * 1024          # conservative: assume the smallest (v7x) VMEM
    return int(cap) * 3 // 4            # leave headroom for compiler scratch / semaphores


def _pick_hp_tile(N, Hp, C, kh, W, vmem_limit):
    # VMEM footprint of one hp group of the x/out block, including (8,128) tile padding.
    per_hp_vmem = C * _round_up(kh, 8) * _round_up(W, 128) * 4
    target = 4 * 1024 * 1024
    t = int(max(1, min(Hp, 8, target // max(per_hp_vmem, 1))))
    # keep enough grid steps for megacore sharding + DMA/compute overlap (aim >= 4).
    needed_h = min(Hp, max(1, -(-4 // N)))
    t = min(t, -(-Hp // needed_h))
    # never let the double-buffered in+out blocks exceed ~half the VMEM budget.
    while t > 1 and 4 * t * per_hp_vmem > vmem_limit // 2:
        t -= 1
    return max(1, t)


def tse_forward(x, w1, b1, w2, b2, kernel):
    """x: (N, C, H, W) float32 NCHW (as in PyTorch).  Returns (N, C, H, W) float32."""
    N, C, H, W = x.shape
    kh, kw = kernel
    Cr = w1.shape[0]
    Hp = -(-H // kh)
    Wp = -(-W // kw)
    H_pad = Hp * kh
    Wp_pad = _round_up(Wp, 128)

    # ---- tiny constants (KB-sized) ----
    cc = [min((j + 1) * kw, W) - j * kw for j in range(Wp)]   # valid cols per window
    PW = np.zeros((W, Wp_pad), np.float32)
    U = np.zeros((Wp_pad, W), np.float32)
    for w in range(W):
        wp = w // kw
        PW[w, wp] = 1.0 / cc[wp]
        U[wp, w] = 1.0
    w1m = np.asarray(w1, np.float32)                  # (Cr, C)
    w2m = np.asarray(w2, np.float32)                  # (C, Cr)
    b1m = np.asarray(b1, np.float32).reshape(-1, 1)   # (Cr, 1)
    b2m = np.asarray(b2, np.float32).reshape(-1, 1)   # (C, 1)

    # ---- (N, C, Hp, kh, W) view of x; pad H only in the ceil-remainder case ----
    xin = x if x.dtype == jnp.float32 else x.astype(jnp.float32)
    if H_pad != H:
        # one copy only when H % kh != 0; metadata-only reshape otherwise
        xin = jnp.pad(xin, ((0, 0), (0, 0), (0, H_pad - H), (0, 0)))
    x5 = xin.reshape(N, C, Hp, kh, W)

    vmem_limit = _vmem_limit_bytes()
    hp_tile = _pick_hp_tile(N, Hp, C, kh, W, vmem_limit)
    num_h = pl.cdiv(Hp, hp_tile)
    grid = (N, num_h)

    flops_per_hp = (C * kh * W                 # kh-row sum
                    + 2 * C * W * Wp_pad       # width-pool matmul
                    + 2 * Cr * C * Wp_pad      # conv1
                    + 2 * C * Cr * Wp_pad      # conv2
                    + 2 * C * Wp_pad * W       # upsample matmul
                    + C * kh * W)              # gate multiply
    cost = pl.CostEstimate(
        flops=int(N * Hp * flops_per_hp),
        transcendentals=int(N * Hp * C * Wp_pad),
        bytes_accessed=int(4 * (2 * N * C * Hp * kh * W + PW.size + U.size
                                + w1m.size + w2m.size + b1m.size + b2m.size)))

    kern = _make_tse_kernel(hp_tile, kh, H, W)
    out_shape = jax.ShapeDtypeStruct((N, C, Hp, kh, W), jnp.float32)
    xo_spec = pl.BlockSpec((None, C, hp_tile, kh, W), lambda n, h: (n, 0, h, 0, 0))

    def build(single_buffer_consts):
        def cspec(shape):
            if single_buffer_consts:
                # grid-invariant operands: no need to double-buffer them
                return pl.BlockSpec(shape, lambda n, h: (0, 0),
                                    pipeline_mode=pl.Buffered(1))
            return pl.BlockSpec(shape, lambda n, h: (0, 0))
        return pl.pallas_call(
            kern,
            out_shape=out_shape,
            grid=grid,
            in_specs=[xo_spec, cspec(PW.shape), cspec(U.shape), cspec(w1m.shape),
                      cspec(b1m.shape), cspec(w2m.shape), cspec(b2m.shape)],
            out_specs=xo_spec,
            compiler_params=pltpu.CompilerParams(
                dimension_semantics=("parallel", "parallel"),
                vmem_limit_bytes=vmem_limit),
            cost_estimate=cost,
        )

    args = (x5, jnp.asarray(PW), jnp.asarray(U), jnp.asarray(w1m),
            jnp.asarray(b1m), jnp.asarray(w2m), jnp.asarray(b2m))
    try:
        out5 = build(True)(*args)
    except Exception:
        # JAX builds without pipeline_mode / Buffered(1) support: default buffering.
        out5 = build(False)(*args)

    out = out5.reshape(N, C, H_pad, W)
    if H_pad != H:
        out = out[:, :, :H, :]          # crop only in the ceil-remainder case
    return out


# --------------------------------------------------------------- reference ---
def tse_reference(x, w1, b1, w2, b2, kernel):
    x = np.asarray(x, np.float64)
    N, C, H, W = x.shape
    kh, kw = kernel
    Hp, Wp = -(-H // kh), -(-W // kw)
    pooled = np.zeros((N, C, Hp, Wp), np.float64)
    for i in range(Hp):
        for j in range(Wp):
            h0, h1 = i * kh, min((i + 1) * kh, H)
            c0, c1 = j * kw, min((j + 1) * kw, W)
            pooled[:, :, i, j] = x[:, :, h0:h1, c0:c1].mean(axis=(2, 3))
    h = np.einsum('oc,nchw->nohw', np.asarray(w1, np.float64), pooled)
    h = np.maximum(h + np.asarray(b1, np.float64)[None, :, None, None], 0.0)
    s = np.einsum('oc,nchw->nohw', np.asarray(w2, np.float64), h)
    s = 1.0 / (1.0 + np.exp(-(s + np.asarray(b2, np.float64)[None, :, None, None])))
    y = np.repeat(s, kh, axis=2)[:, :, :H, :]
    y = np.repeat(y, kw, axis=3)[:, :, :, :W]
    return (x * y).astype(np.float32)


# -------------------------------------------------------------------- main ---
def _run_case(key, N, C, H, W, kernel, se_ratio):
    Cr = max(1, C // se_ratio)
    kx, kw1, kb1, kw2, kb2 = jax.random.split(key, 5)
    x = jax.random.normal(kx, (N, C, H, W), dtype=jnp.float32)
    w1 = jax.random.normal(kw1, (Cr, C), dtype=jnp.float32) * 0.3
    b1 = jax.random.normal(kb1, (Cr,), dtype=jnp.float32) * 0.1
    w2 = jax.random.normal(kw2, (C, Cr), dtype=jnp.float32) * 0.3
    b2 = jax.random.normal(kb2, (C,), dtype=jnp.float32) * 0.1
    out = jax.block_until_ready(tse_forward(x, w1, b1, w2, b2, kernel))
    ref = tse_reference(np.asarray(x), np.asarray(w1), np.asarray(b1),
                        np.asarray(w2), np.asarray(b2), kernel)
    np.testing.assert_allclose(np.asarray(out), ref, rtol=1e-4, atol=1e-4)


if __name__ == "__main__":
    key = jax.random.PRNGKey(0)
    k1, k2, k3 = jax.random.split(key, 3)
    # ceil-mode remainder in both H and W (10 % 3 != 0): exercises padded-H path + divisor.
    _run_case(k1, N=2, C=8, H=10, W=10, kernel=(3, 3), se_ratio=4)
    # evenly dividing case (no wrapper pad/crop at all), N=1: megacore row-tiling path.
    _run_case(k2, N=1, C=4, H=16, W=16, kernel=(2, 2), se_ratio=2)
    # Hp not divisible by hp_tile: exercises the partial-boundary-tile (masked write) path.
    _run_case(k3, N=1, C=4, H=10, W=8, kernel=(2, 2), se_ratio=2)
    print("KERNEL_OK")
</pallas_src>

<mosaic_0001>
module attributes {stable_mosaic.version = 11 : i64} {
  func.func @kernel(%arg0: i32, %arg1: i32, %arg2: memref<1x8x2x3x10xf32, #tpu.memory_space<vmem>>, %arg3: memref<10x128xf32, #tpu.memory_space<vmem>>, %arg4: memref<128x10xf32, #tpu.memory_space<vmem>>, %arg5: memref<2x8xf32, #tpu.memory_space<vmem>>, %arg6: memref<2x1xf32, #tpu.memory_space<vmem>>, %arg7: memref<8x2xf32, #tpu.memory_space<vmem>>, %arg8: memref<8x1xf32, #tpu.memory_space<vmem>>, %arg9: memref<1x8x2x3x10xf32, #tpu.memory_space<vmem>>) attributes {dimension_semantics = [#tpu.dimension_semantics<parallel>, #tpu.dimension_semantics<parallel>], iteration_bounds = array<i64: 2, 2>, scalar_prefetch = 0 : i64, scratch_operands = 0 : i64, tpu.core_type = #tpu.core_type<tc>, window_params = [{transform_indices = @transform_0, window_bounds = array<i64: 1, 8, 2, 3, 10>}, {pipeline_mode = #tpu.pipeline_mode<synchronous>, transform_indices = @transform_1, window_bounds = array<i64: 10, 128>}, {pipeline_mode = #tpu.pipeline_mode<synchronous>, transform_indices = @transform_2, window_bounds = array<i64: 128, 10>}, {pipeline_mode = #tpu.pipeline_mode<synchronous>, transform_indices = @transform_3, window_bounds = array<i64: 2, 8>}, {pipeline_mode = #tpu.pipeline_mode<synchronous>, transform_indices = @transform_4, window_bounds = array<i64: 2, 1>}, {pipeline_mode = #tpu.pipeline_mode<synchronous>, transform_indices = @transform_5, window_bounds = array<i64: 8, 2>}, {pipeline_mode = #tpu.pipeline_mode<synchronous>, transform_indices = @transform_6, window_bounds = array<i64: 8, 1>}, {transform_indices = @transform_7, window_bounds = array<i64: 1, 8, 2, 3, 10>}]} {
    %c0 = arith.constant 0 : index
    %c0_0 = arith.constant 0 : index
    %c0_1 = arith.constant 0 : index
    %c0_2 = arith.constant 0 : index
    %c0_3 = arith.constant 0 : index
    %0 = vector.load %arg2[%c0, %c0_0, %c0_1, %c0_2, %c0_3] : memref<1x8x2x3x10xf32, #tpu.memory_space<vmem>>, vector<1x8x1x3x10xf32>
    %1 = vector.shape_cast %0 : vector<1x8x1x3x10xf32> to vector<8x3x10xf32>
    %cst = arith.constant dense<0.000000e+00> : vector<8x10xf32>
    %2 = vector.multi_reduction <add>, %1, %cst [1] : vector<8x3x10xf32> to vector<8x10xf32>
    %c0_4 = arith.constant 0 : index
    %c0_5 = arith.constant 0 : index
    %3 = vector.load %arg3[%c0_4, %c0_5] : memref<10x128xf32, #tpu.memory_space<vmem>>, vector<10x128xf32>
    %cst_6 = arith.constant dense<0.000000e+00> : vector<8x128xf32>
    %4 = tpu.matmul %2, %3, %cst_6 {dimension_numbers = #tpu.dot_dimension_numbers<[1], [0], [0], [1], [0, 0, 1, 1], [], []>} : vector<8x10xf32>, vector<10x128xf32>, vector<8x128xf32> -> vector<8x128xf32>
    %c2_i32 = arith.constant 2 : i32
    %5 = arith.muli %arg1, %c2_i32 : i32
    %c0_i32 = arith.constant 0 : i32
    %6 = arith.addi %5, %c0_i32 : i32
    %c3_i32 = arith.constant 3 : i32
    %7 = arith.muli %6, %c3_i32 : i32
    %c10_i32 = arith.constant 10 : i32
    %8 = arith.subi %c10_i32, %7 : i32
    %c1_i32 = arith.constant 1 : i32
    %c3_i32_7 = arith.constant 3 : i32
    %9 = arith.maxsi %c1_i32, %8 : i32
    %10 = arith.minsi %c3_i32_7, %9 : i32
    %11 = arith.sitofp %10 : i32 to f32
    %cst_8 = arith.constant 1.000000e+00 : f32
    %12 = arith.divf %cst_8, %11 : f32
    %13 = vector.broadcast %12 : f32 to vector<8x128xf32>
    %14 = arith.mulf %4, %13 : vector<8x128xf32>
    %c0_9 = arith.constant 0 : index
    %c0_10 = arith.constant 0 : index
    %15 = vector.load %arg5[%c0_9, %c0_10] : memref<2x8xf32, #tpu.memory_space<vmem>>, vector<2x8xf32>
    %cst_11 = arith.constant dense<0.000000e+00> : vector<2x128xf32>
    %16 = tpu.matmul %15, %14, %cst_11 {dimension_numbers = #tpu.dot_dimension_numbers<[1], [0], [0], [1], [0, 0, 1, 1], [], []>} : vector<2x8xf32>, vector<8x128xf32>, vector<2x128xf32> -> vector<2x128xf32>
    %c0_12 = arith.constant 0 : index
    %c0_13 = arith.constant 0 : index
    %17 = vector.load %arg6[%c0_12, %c0_13] : memref<2x1xf32, #tpu.memory_space<vmem>>, vector<2x1xf32>
    %18 = vector.broadcast %17 : vector<2x1xf32> to vector<2x128xf32>
    %19 = arith.addf %16, %18 : vector<2x128xf32>
    %cst_14 = arith.constant 0.000000e+00 : f32
    %20 = vector.broadcast %cst_14 : f32 to vector<2x128xf32>
    %21 = arith.maximumf %19, %20 : vector<2x128xf32>
    %c0_15 = arith.constant 0 : index
    %c0_16 = arith.constant 0 : index
    %22 = vector.load %arg7[%c0_15, %c0_16] : memref<8x2xf32, #tpu.memory_space<vmem>>, vector<8x2xf32>
    %cst_17 = arith.constant dense<0.000000e+00> : vector<8x128xf32>
    %23 = tpu.matmul %22, %21, %cst_17 {dimension_numbers = #tpu.dot_dimension_numbers<[1], [0], [0], [1], [0, 0, 1, 1], [], []>} : vector<8x2xf32>, vector<2x128xf32>, vector<8x128xf32> -> vector<8x128xf32>
    %c0_18 = arith.constant 0 : index
    %c0_19 = arith.constant 0 : index
    %24 = vector.load %arg8[%c0_18, %c0_19] : memref<8x1xf32, #tpu.memory_space<vmem>>, vector<8x1xf32>
    %25 = vector.broadcast %24 : vector<8x1xf32> to vector<8x128xf32>
    %26 = arith.addf %23, %25 : vector<8x128xf32>
    %27 = arith.negf %26 : vector<8x128xf32>
    %28 = math.exp %27 : vector<8x128xf32>
    %cst_20 = arith.constant 1.000000e+00 : f32
    %29 = vector.broadcast %cst_20 : f32 to vector<8x128xf32>
    %30 = arith.addf %29, %28 : vector<8x128xf32>
    %31 = arith.divf %29, %30 : vector<8x128xf32>
    %c0_21 = arith.constant 0 : index
    %c0_22 = arith.constant 0 : index
    %32 = vector.load %arg4[%c0_21, %c0_22] : memref<128x10xf32, #tpu.memory_space<vmem>>, vector<128x10xf32>
    %cst_23 = arith.constant dense<0.000000e+00> : vector<8x10xf32>
    %33 = tpu.matmul %31, %32, %cst_23 {dimension_numbers = #tpu.dot_dimension_numbers<[1], [0], [0], [1], [0, 0, 1, 1], [], []>} : vector<8x128xf32>, vector<128x10xf32>, vector<8x10xf32> -> vector<8x10xf32>
    %34 = vector.shape_cast %33 : vector<8x10xf32> to vector<8x1x10xf32>
    %35 = vector.broadcast %34 : vector<8x1x10xf32> to vector<8x3x10xf32>
    %36 = arith.mulf %1, %35 : vector<8x3x10xf32>
    %c0_24 = arith.constant 0 : index
    %c0_25 = arith.constant 0 : index
    %c0_26 = arith.constant 0 : index
    %c0_27 = arith.constant 0 : index
    %c0_28 = arith.constant 0 : index
    %37 = vector.load %arg9[%c0_24, %c0_25, %c0_26, %c0_27, %c0_28] : memref<1x8x2x3x10xf32, #tpu.memory_space<vmem>>, vector<1x8x1x3x10xf32>
    %38 = vector.shape_cast %37 : vector<1x8x1x3x10xf32> to vector<8x3x10xf32>
    %39 = vector.shape_cast %36 : vector<8x3x10xf32> to vector<1x8x1x3x10xf32>
    tpu.vector_store %arg9[%c0_24, %c0_25, %c0_26, %c0_27, %c0_28], %39 {strides = array<i32>} : memref<1x8x2x3x10xf32, #tpu.memory_space<vmem>>, vector<1x8x1x3x10xf32>,
    %c0_29 = arith.constant 0 : index
    %c0_30 = arith.constant 0 : index
    %c1 = arith.constant 1 : index
    %c0_31 = arith.constant 0 : index
    %c0_32 = arith.constant 0 : index
    %40 = vector.load %arg2[%c0_29, %c0_30, %c1, %c0_31, %c0_32] : memref<1x8x2x3x10xf32, #tpu.memory_space<vmem>>, vector<1x8x1x3x10xf32>
    %41 = vector.shape_cast %40 : vector<1x8x1x3x10xf32> to vector<8x3x10xf32>
    %cst_33 = arith.constant dense<0.000000e+00> : vector<8x10xf32>
    %42 = vector.multi_reduction <add>, %41, %cst_33 [1] : vector<8x3x10xf32> to vector<8x10xf32>
    %c0_34 = arith.constant 0 : index
    %c0_35 = arith.constant 0 : index
    %43 = vector.load %arg3[%c0_34, %c0_35] : memref<10x128xf32, #tpu.memory_space<vmem>>, vector<10x128xf32>
    %cst_36 = arith.constant dense<0.000000e+00> : vector<8x128xf32>
    %44 = tpu.matmul %42, %43, %cst_36 {dimension_numbers = #tpu.dot_dimension_numbers<[1], [0], [0], [1], [0, 0, 1, 1], [], []>} : vector<8x10xf32>, vector<10x128xf32>, vector<8x128xf32> -> vector<8x128xf32>
    %c2_i32_37 = arith.constant 2 : i32
    %45 = arith.muli %arg1, %c2_i32_37 : i32
    %c1_i32_38 = arith.constant 1 : i32
    %46 = arith.addi %45, %c1_i32_38 : i32
    %c3_i32_39 = arith.constant 3 : i32
    %47 = arith.muli %46, %c3_i32_39 : i32
    %c10_i32_40 = arith.constant 10 : i32
    %48 = arith.subi %c10_i32_40, %47 : i32
    %c1_i32_41 = arith.constant 1 : i32
    %c3_i32_42 = arith.constant 3 : i32
    %49 = arith.maxsi %c1_i32_41, %48 : i32
    %50 = arith.minsi %c3_i32_42, %49 : i32
    %51 = arith.sitofp %50 : i32 to f32
    %cst_43 = arith.constant 1.000000e+00 : f32
    %52 = arith.divf %cst_43, %51 : f32
    %53 = vector.broadcast %52 : f32 to vector<8x128xf32>
    %54 = arith.mulf %44, %53 : vector<8x128xf32>
    %c0_44 = arith.constant 0 : index
    %c0_45 = arith.constant 0 : index
    %55 = vector.load %arg5[%c0_44, %c0_45] : memref<2x8xf32, #tpu.memory_space<vmem>>, vector<2x8xf32>
    %cst_46 = arith.constant dense<0.000000e+00> : vector<2x128xf32>
    %56 = tpu.matmul %55, %54, %cst_46 {dimension_numbers = #tpu.dot_dimension_numbers<[1], [0], [0], [1], [0, 0, 1, 1], [], []>} : vector<2x8xf32>, vector<8x128xf32>, vector<2x128xf32> -> vector<2x128xf32>
    %c0_47 = arith.constant 0 : index
    %c0_48 = arith.constant 0 : index
    %57 = vector.load %arg6[%c0_47, %c0_48] : memref<2x1xf32, #tpu.memory_space<vmem>>, vector<2x1xf32>
    %58 = vector.broadcast %57 : vector<2x1xf32> to vector<2x128xf32>
    %59 = arith.addf %56, %58 : vector<2x128xf32>
    %cst_49 = arith.constant 0.000000e+00 : f32
    %60 = vector.broadcast %cst_49 : f32 to vector<2x128xf32>
    %61 = arith.maximumf %59, %60 : vector<2x128xf32>
    %c0_50 = arith.constant 0 : index
    %c0_51 = arith.constant 0 : index
    %62 = vector.load %arg7[%c0_50, %c0_51] : memref<8x2xf32, #tpu.memory_space<vmem>>, vector<8x2xf32>
    %cst_52 = arith.constant dense<0.000000e+00> : vector<8x128xf32>
    %63 = tpu.matmul %62, %61, %cst_52 {dimension_numbers = #tpu.dot_dimension_numbers<[1], [0], [0], [1], [0, 0, 1, 1], [], []>} : vector<8x2xf32>, vector<2x128xf32>, vector<8x128xf32> -> vector<8x128xf32>
    %c0_53 = arith.constant 0 : index
    %c0_54 = arith.constant 0 : index
    %64 = vector.load %arg8[%c0_53, %c0_54] : memref<8x1xf32, #tpu.memory_space<vmem>>, vector<8x1xf32>
    %65 = vector.broadcast %64 : vector<8x1xf32> to vector<8x128xf32>
    %66 = arith.addf %63, %65 : vector<8x128xf32>
    %67 = arith.negf %66 : vector<8x128xf32>
    %68 = math.exp %67 : vector<8x128xf32>
    %cst_55 = arith.constant 1.000000e+00 : f32
    %69 = vector.broadcast %cst_55 : f32 to vector<8x128xf32>
    %70 = arith.addf %69, %68 : vector<8x128xf32>
    %71 = arith.divf %69, %70 : vector<8x128xf32>
    %c0_56 = arith.constant 0 : index
    %c0_57 = arith.constant 0 : index
    %72 = vector.load %arg4[%c0_56, %c0_57] : memref<128x10xf32, #tpu.memory_space<vmem>>, vector<128x10xf32>
    %cst_58 = arith.constant dense<0.000000e+00> : vector<8x10xf32>
    %73 = tpu.matmul %71, %72, %cst_58 {dimension_numbers = #tpu.dot_dimension_numbers<[1], [0], [0], [1], [0, 0, 1, 1], [], []>} : vector<8x128xf32>, vector<128x10xf32>, vector<8x10xf32> -> vector<8x10xf32>
    %74 = vector.shape_cast %73 : vector<8x10xf32> to vector<8x1x10xf32>
    %75 = vector.broadcast %74 : vector<8x1x10xf32> to vector<8x3x10xf32>
    %76 = arith.mulf %41, %75 : vector<8x3x10xf32>
    %c0_59 = arith.constant 0 : index
    %c0_60 = arith.constant 0 : index
    %c1_61 = arith.constant 1 : index
    %c0_62 = arith.constant 0 : index
    %c0_63 = arith.constant 0 : index
    %77 = vector.load %arg9[%c0_59, %c0_60, %c1_61, %c0_62, %c0_63] : memref<1x8x2x3x10xf32, #tpu.memory_space<vmem>>, vector<1x8x1x3x10xf32>
    %78 = vector.shape_cast %77 : vector<1x8x1x3x10xf32> to vector<8x3x10xf32>
    %79 = vector.shape_cast %76 : vector<8x3x10xf32> to vector<1x8x1x3x10xf32>
    tpu.vector_store %arg9[%c0_59, %c0_60, %c1_61, %c0_62, %c0_63], %79 {strides = array<i32>} : memref<1x8x2x3x10xf32, #tpu.memory_space<vmem>>, vector<1x8x1x3x10xf32>,
    return
  }
  func.func @transform_0(%arg0: i32, %arg1: i32) -> (i32, i32, i32, i32, i32) {
    %c0_i32 = arith.constant 0 : i32
    %c0_i32_0 = arith.constant 0 : i32
    %c0_i32_1 = arith.constant 0 : i32
    %c0_i32_2 = arith.constant 0 : i32
    return %arg0, %c0_i32, %arg1, %c0_i32_0, %c0_i32_1 : i32, i32, i32, i32, i32
  }
  func.func @transform_1(%arg0: i32, %arg1: i32) -> (i32, i32) {
    %c0_i32 = arith.constant 0 : i32
    %c0_i32_0 = arith.constant 0 : i32
    %c0_i32_1 = arith.constant 0 : i32
    return %c0_i32, %c0_i32_0 : i32, i32
  }
  func.func @transform_2(%arg0: i32, %arg1: i32) -> (i32, i32) {
    %c0_i32 = arith.constant 0 : i32
    %c0_i32_0 = arith.constant 0 : i32
    %c0_i32_1 = arith.constant 0 : i32
    return %c0_i32, %c0_i32_0 : i32, i32
  }
  func.func @transform_3(%arg0: i32, %arg1: i32) -> (i32, i32) {
    %c0_i32 = arith.constant 0 : i32
    %c0_i32_0 = arith.constant 0 : i32
    %c0_i32_1 = arith.constant 0 : i32
    return %c0_i32, %c0_i32_0 : i32, i32
  }
  func.func @transform_4(%arg0: i32, %arg1: i32) -> (i32, i32) {
    %c0_i32 = arith.constant 0 : i32
    %c0_i32_0 = arith.constant 0 : i32
    %c0_i32_1 = arith.constant 0 : i32
    return %c0_i32, %c0_i32_0 : i32, i32
  }
  func.func @transform_5(%arg0: i32, %arg1: i32) -> (i32, i32) {
    %c0_i32 = arith.constant 0 : i32
    %c0_i32_0 = arith.constant 0 : i32
    %c0_i32_1 = arith.constant 0 : i32
    return %c0_i32, %c0_i32_0 : i32, i32
  }
  func.func @transform_6(%arg0: i32, %arg1: i32) -> (i32, i32) {
    %c0_i32 = arith.constant 0 : i32
    %c0_i32_0 = arith.constant 0 : i32
    %c0_i32_1 = arith.constant 0 : i32
    return %c0_i32, %c0_i32_0 : i32, i32
  }
  func.func @transform_7(%arg0: i32, %arg1: i32) -> (i32, i32, i32, i32, i32) {
    %c0_i32 = arith.constant 0 : i32
    %c0_i32_0 = arith.constant 0 : i32
    %c0_i32_1 = arith.constant 0 : i32
    %c0_i32_2 = arith.constant 0 : i32
    return %arg0, %c0_i32, %arg1, %c0_i32_0, %c0_i32_1 : i32, i32, i32, i32, i32
  }
}

module attributes {stable_mosaic.version = 11 : i64} {
  func.func @kernel(%arg0: i32, %arg1: i32, %arg2: memref<1x8x2x3x10xf32, #tpu.memory_space<vmem>>, %arg3: memref<10x128xf32, #tpu.memory_space<vmem>>, %arg4: memref<128x10xf32, #tpu.memory_space<vmem>>, %arg5: memref<2x8xf32, #tpu.memory_space<vmem>>, %arg6: memref<2x1xf32, #tpu.memory_space<vmem>>, %arg7: memref<8x2xf32, #tpu.memory_space<vmem>>, %arg8: memref<8x1xf32, #tpu.memory_space<vmem>>, %arg9: memref<1x8x2x3x10xf32, #tpu.memory_space<vmem>>) attributes {dimension_semantics = [#tpu.dimension_semantics<parallel>, #tpu.dimension_semantics<parallel>], iteration_bounds = array<i64: 2, 2>, scalar_prefetch = 0 : i64, scratch_operands = 0 : i64, tpu.core_type = #tpu.core_type<tc>, window_params = [{transform_indices = @transform_0, window_bounds = array<i64: 1, 8, 2, 3, 10>}, {pipeline_mode = #tpu.pipeline_mode<synchronous>, transform_indices = @transform_1, window_bounds = array<i64: 10, 128>}, {pipeline_mode = #tpu.pipeline_mode<synchronous>, transform_indices = @transform_2, window_bounds = array<i64: 128, 10>}, {pipeline_mode = #tpu.pipeline_mode<synchronous>, transform_indices = @transform_3, window_bounds = array<i64: 2, 8>}, {pipeline_mode = #tpu.pipeline_mode<synchronous>, transform_indices = @transform_4, window_bounds = array<i64: 2, 1>}, {pipeline_mode = #tpu.pipeline_mode<synchronous>, transform_indices = @transform_5, window_bounds = array<i64: 8, 2>}, {pipeline_mode = #tpu.pipeline_mode<synchronous>, transform_indices = @transform_6, window_bounds = array<i64: 8, 1>}, {transform_indices = @transform_7, window_bounds = array<i64: 1, 8, 2, 3, 10>}]} {
    %c0 = arith.constant 0 : index
    %c0_0 = arith.constant 0 : index
    %c0_1 = arith.constant 0 : index
    %c0_2 = arith.constant 0 : index
    %c0_3 = arith.constant 0 : index
    %0 = vector.load %arg2[%c0, %c0_0, %c0_1, %c0_2, %c0_3] : memref<1x8x2x3x10xf32, #tpu.memory_space<vmem>>, vector<1x8x1x3x10xf32>
    %1 = vector.shape_cast %0 : vector<1x8x1x3x10xf32> to vector<8x3x10xf32>
    %cst = arith.constant dense<0.000000e+00> : vector<8x10xf32>
    %2 = vector.multi_reduction <add>, %1, %cst [1] : vector<8x3x10xf32> to vector<8x10xf32>
    %c0_4 = arith.constant 0 : index
    %c0_5 = arith.constant 0 : index
    %3 = vector.load %arg3[%c0_4, %c0_5] : memref<10x128xf32, #tpu.memory_space<vmem>>, vector<10x128xf32>
    %cst_6 = arith.constant dense<0.000000e+00> : vector<8x128xf32>
    %4 = tpu.matmul %2, %3, %cst_6 {dimension_numbers = #tpu.dot_dimension_numbers<[1], [0], [0], [1], [0, 0, 1, 1], [], []>} : vector<8x10xf32>, vector<10x128xf32>, vector<8x128xf32> -> vector<8x128xf32>
    %c2_i32 = arith.constant 2 : i32
    %5 = arith.muli %arg1, %c2_i32 : i32
    %c0_i32 = arith.constant 0 : i32
    %6 = arith.addi %5, %c0_i32 : i32
    %c3_i32 = arith.constant 3 : i32
    %7 = arith.muli %6, %c3_i32 : i32
    %c10_i32 = arith.constant 10 : i32
    %8 = arith.subi %c10_i32, %7 : i32
    %c1_i32 = arith.constant 1 : i32
    %c3_i32_7 = arith.constant 3 : i32
    %9 = arith.maxsi %c1_i32, %8 : i32
    %10 = arith.minsi %c3_i32_7, %9 : i32
    %11 = arith.sitofp %10 : i32 to f32
    %cst_8 = arith.constant 1.000000e+00 : f32
    %12 = arith.divf %cst_8, %11 : f32
    %13 = vector.broadcast %12 : f32 to vector<8x128xf32>
    %14 = arith.mulf %4, %13 : vector<8x128xf32>
    %c0_9 = arith.constant 0 : index
    %c0_10 = arith.constant 0 : index
    %15 = vector.load %arg5[%c0_9, %c0_10] : memref<2x8xf32, #tpu.memory_space<vmem>>, vector<2x8xf32>
    %cst_11 = arith.constant dense<0.000000e+00> : vector<2x128xf32>
    %16 = tpu.matmul %15, %14, %cst_11 {dimension_numbers = #tpu.dot_dimension_numbers<[1], [0], [0], [1], [0, 0, 1, 1], [], []>} : vector<2x8xf32>, vector<8x128xf32>, vector<2x128xf32> -> vector<2x128xf32>
    %c0_12 = arith.constant 0 : index
    %c0_13 = arith.constant 0 : index
    %17 = vector.load %arg6[%c0_12, %c0_13] : memref<2x1xf32, #tpu.memory_space<vmem>>, vector<2x1xf32>
    %18 = vector.broadcast %17 : vector<2x1xf32> to vector<2x128xf32>
    %19 = arith.addf %16, %18 : vector<2x128xf32>
    %cst_14 = arith.constant 0.000000e+00 : f32
    %20 = vector.broadcast %cst_14 : f32 to vector<2x128xf32>
    %21 = arith.maximumf %19, %20 : vector<2x128xf32>
    %c0_15 = arith.constant 0 : index
    %c0_16 = arith.constant 0 : index
    %22 = vector.load %arg7[%c0_15, %c0_16] : memref<8x2xf32, #tpu.memory_space<vmem>>, vector<8x2xf32>
    %cst_17 = arith.constant dense<0.000000e+00> : vector<8x128xf32>
    %23 = tpu.matmul %22, %21, %cst_17 {dimension_numbers = #tpu.dot_dimension_numbers<[1], [0], [0], [1], [0, 0, 1, 1], [], []>} : vector<8x2xf32>, vector<2x128xf32>, vector<8x128xf32> -> vector<8x128xf32>
    %c0_18 = arith.constant 0 : index
    %c0_19 = arith.constant 0 : index
    %24 = vector.load %arg8[%c0_18, %c0_19] : memref<8x1xf32, #tpu.memory_space<vmem>>, vector<8x1xf32>
    %25 = vector.broadcast %24 : vector<8x1xf32> to vector<8x128xf32>
    %26 = arith.addf %23, %25 : vector<8x128xf32>
    %27 = arith.negf %26 : vector<8x128xf32>
    %28 = math.exp %27 : vector<8x128xf32>
    %cst_20 = arith.constant 1.000000e+00 : f32
    %29 = vector.broadcast %cst_20 : f32 to vector<8x128xf32>
    %30 = arith.addf %29, %28 : vector<8x128xf32>
    %31 = arith.divf %29, %30 : vector<8x128xf32>
    %c0_21 = arith.constant 0 : index
    %c0_22 = arith.constant 0 : index
    %32 = vector.load %arg4[%c0_21, %c0_22] : memref<128x10xf32, #tpu.memory_space<vmem>>, vector<128x10xf32>
    %cst_23 = arith.constant dense<0.000000e+00> : vector<8x10xf32>
    %33 = tpu.matmul %31, %32, %cst_23 {dimension_numbers = #tpu.dot_dimension_numbers<[1], [0], [0], [1], [0, 0, 1, 1], [], []>} : vector<8x128xf32>, vector<128x10xf32>, vector<8x10xf32> -> vector<8x10xf32>
    %34 = vector.shape_cast %33 : vector<8x10xf32> to vector<8x1x10xf32>
    %35 = vector.broadcast %34 : vector<8x1x10xf32> to vector<8x3x10xf32>
    %36 = arith.mulf %1, %35 : vector<8x3x10xf32>
    %c0_24 = arith.constant 0 : index
    %c0_25 = arith.constant 0 : index
    %c0_26 = arith.constant 0 : index
    %c0_27 = arith.constant 0 : index
    %c0_28 = arith.constant 0 : index
    %37 = vector.load %arg9[%c0_24, %c0_25, %c0_26, %c0_27, %c0_28] : memref<1x8x2x3x10xf32, #tpu.memory_space<vmem>>, vector<1x8x1x3x10xf32>
    %38 = vector.shape_cast %37 : vector<1x8x1x3x10xf32> to vector<8x3x10xf32>
    %39 = vector.shape_cast %36 : vector<8x3x10xf32> to vector<1x8x1x3x10xf32>
    tpu.vector_store %arg9[%c0_24, %c0_25, %c0_26, %c0_27, %c0_28], %39 {strides = array<i32>} : memref<1x8x2x3x10xf32, #tpu.memory_space<vmem>>, vector<1x8x1x3x10xf32>,
    %c0_29 = arith.constant 0 : index
    %c0_30 = arith.constant 0 : index
    %c1 = arith.constant 1 : index
    %c0_31 = arith.constant 0 : index
    %c0_32 = arith.constant 0 : index
    %40 = vector.load %arg2[%c0_29, %c0_30, %c1, %c0_31, %c0_32] : memref<1x8x2x3x10xf32, #tpu.memory_space<vmem>>, vector<1x8x1x3x10xf32>
    %41 = vector.shape_cast %40 : vector<1x8x1x3x10xf32> to vector<8x3x10xf32>
    %cst_33 = arith.constant dense<0.000000e+00> : vector<8x10xf32>
    %42 = vector.multi_reduction <add>, %41, %cst_33 [1] : vector<8x3x10xf32> to vector<8x10xf32>
    %c0_34 = arith.constant 0 : index
    %c0_35 = arith.constant 0 : index
    %43 = vector.load %arg3[%c0_34, %c0_35] : memref<10x128xf32, #tpu.memory_space<vmem>>, vector<10x128xf32>
    %cst_36 = arith.constant dense<0.000000e+00> : vector<8x128xf32>
    %44 = tpu.matmul %42, %43, %cst_36 {dimension_numbers = #tpu.dot_dimension_numbers<[1], [0], [0], [1], [0, 0, 1, 1], [], []>} : vector<8x10xf32>, vector<10x128xf32>, vector<8x128xf32> -> vector<8x128xf32>
    %c2_i32_37 = arith.constant 2 : i32
    %45 = arith.muli %arg1, %c2_i32_37 : i32
    %c1_i32_38 = arith.constant 1 : i32
    %46 = arith.addi %45, %c1_i32_38 : i32
    %c3_i32_39 = arith.constant 3 : i32
    %47 = arith.muli %46, %c3_i32_39 : i32
    %c10_i32_40 = arith.constant 10 : i32
    %48 = arith.subi %c10_i32_40, %47 : i32
    %c1_i32_41 = arith.constant 1 : i32
    %c3_i32_42 = arith.constant 3 : i32
    %49 = arith.maxsi %c1_i32_41, %48 : i32
    %50 = arith.minsi %c3_i32_42, %49 : i32
    %51 = arith.sitofp %50 : i32 to f32
    %cst_43 = arith.constant 1.000000e+00 : f32
    %52 = arith.divf %cst_43, %51 : f32
    %53 = vector.broadcast %52 : f32 to vector<8x128xf32>
    %54 = arith.mulf %44, %53 : vector<8x128xf32>
    %c0_44 = arith.constant 0 : index
    %c0_45 = arith.constant 0 : index
    %55 = vector.load %arg5[%c0_44, %c0_45] : memref<2x8xf32, #tpu.memory_space<vmem>>, vector<2x8xf32>
    %cst_46 = arith.constant dense<0.000000e+00> : vector<2x128xf32>
    %56 = tpu.matmul %55, %54, %cst_46 {dimension_numbers = #tpu.dot_dimension_numbers<[1], [0], [0], [1], [0, 0, 1, 1], [], []>} : vector<2x8xf32>, vector<8x128xf32>, vector<2x128xf32> -> vector<2x128xf32>
    %c0_47 = arith.constant 0 : index
    %c0_48 = arith.constant 0 : index
    %57 = vector.load %arg6[%c0_47, %c0_48] : memref<2x1xf32, #tpu.memory_space<vmem>>, vector<2x1xf32>
    %58 = vector.broadcast %57 : vector<2x1xf32> to vector<2x128xf32>
    %59 = arith.addf %56, %58 : vector<2x128xf32>
    %cst_49 = arith.constant 0.000000e+00 : f32
    %60 = vector.broadcast %cst_49 : f32 to vector<2x128xf32>
    %61 = arith.maximumf %59, %60 : vector<2x128xf32>
    %c0_50 = arith.constant 0 : index
    %c0_51 = arith.constant 0 : index
    %62 = vector.load %arg7[%c0_50, %c0_51] : memref<8x2xf32, #tpu.memory_space<vmem>>, vector<8x2xf32>
    %cst_52 = arith.constant dense<0.000000e+00> : vector<8x128xf32>
    %63 = tpu.matmul %62, %61, %cst_52 {dimension_numbers = #tpu.dot_dimension_numbers<[1], [0], [0], [1], [0, 0, 1, 1], [], []>} : vector<8x2xf32>, vector<2x128xf32>, vector<8x128xf32> -> vector<8x128xf32>
    %c0_53 = arith.constant 0 : index
    %c0_54 = arith.constant 0 : index
    %64 = vector.load %arg8[%c0_53, %c0_54] : memref<8x1xf32, #tpu.memory_space<vmem>>, vector<8x1xf32>
    %65 = vector.broadcast %64 : vector<8x1xf32> to vector<8x128xf32>
    %66 = arith.addf %63, %65 : vector<8x128xf32>
    %67 = arith.negf %66 : vector<8x128xf32>
    %68 = math.exp %67 : vector<8x128xf32>
    %cst_55 = arith.constant 1.000000e+00 : f32
    %69 = vector.broadcast %cst_55 : f32 to vector<8x128xf32>
    %70 = arith.addf %69, %68 : vector<8x128xf32>
    %71 = arith.divf %69, %70 : vector<8x128xf32>
    %c0_56 = arith.constant 0 : index
    %c0_57 = arith.constant 0 : index
    %72 = vector.load %arg4[%c0_56, %c0_57] : memref<128x10xf32, #tpu.memory_space<vmem>>, vector<128x10xf32>
    %cst_58 = arith.constant dense<0.000000e+00> : vector<8x10xf32>
    %73 = tpu.matmul %71, %72, %cst_58 {dimension_numbers = #tpu.dot_dimension_numbers<[1], [0], [0], [1], [0, 0, 1, 1], [], []>} : vector<8x128xf32>, vector<128x10xf32>, vector<8x10xf32> -> vector<8x10xf32>
    %74 = vector.shape_cast %73 : vector<8x10xf32> to vector<8x1x10xf32>
    %75 = vector.broadcast %74 : vector<8x1x10xf32> to vector<8x3x10xf32>
    %76 = arith.mulf %41, %75 : vector<8x3x10xf32>
    %c0_59 = arith.constant 0 : index
    %c0_60 = arith.constant 0 : index
    %c1_61 = arith.constant 1 : index
    %c0_62 = arith.constant 0 : index
    %c0_63 = arith.constant 0 : index
    %77 = vector.load %arg9[%c0_59, %c0_60, %c1_61, %c0_62, %c0_63] : memref<1x8x2x3x10xf32, #tpu.memory_space<vmem>>, vector<1x8x1x3x10xf32>
    %78 = vector.shape_cast %77 : vector<1x8x1x3x10xf32> to vector<8x3x10xf32>
    %79 = vector.shape_cast %76 : vector<8x3x10xf32> to vector<1x8x1x3x10xf32>
    tpu.vector_store %arg9[%c0_59, %c0_60, %c1_61, %c0_62, %c0_63], %79 {strides = array<i32>} : memref<1x8x2x3x10xf32, #tpu.memory_space<vmem>>, vector<1x8x1x3x10xf32>,
    return
  }
  func.func @transform_0(%arg0: i32, %arg1: i32) -> (i32, i32, i32, i32, i32) {
    %c0_i32 = arith.constant 0 : i32
    %c0_i32_0 = arith.constant 0 : i32
    %c0_i32_1 = arith.constant 0 : i32
    %c0_i32_2 = arith.constant 0 : i32
    return %arg0, %c0_i32, %arg1, %c0_i32_0, %c0_i32_1 : i32, i32, i32, i32, i32
  }
  func.func @transform_1(%arg0: i32, %arg1: i32) -> (i32, i32) {
    %c0_i32 = arith.constant 0 : i32
    %c0_i32_0 = arith.constant 0 : i32
    %c0_i32_1 = arith.constant 0 : i32
    return %c0_i32, %c0_i32_0 : i32, i32
  }
  func.func @transform_2(%arg0: i32, %arg1: i32) -> (i32, i32) {
    %c0_i32 = arith.constant 0 : i32
    %c0_i32_0 = arith.constant 0 : i32
    %c0_i32_1 = arith.constant 0 : i32
    return %c0_i32, %c0_i32_0 : i32, i32
  }
  func.func @transform_3(%arg0: i32, %arg1: i32) -> (i32, i32) {
    %c0_i32 = arith.constant 0 : i32
    %c0_i32_0 = arith.constant 0 : i32
    %c0_i32_1 = arith.constant 0 : i32
    return %c0_i32, %c0_i32_0 : i32, i32
  }
  func.func @transform_4(%arg0: i32, %arg1: i32) -> (i32, i32) {
    %c0_i32 = arith.constant 0 : i32
    %c0_i32_0 = arith.constant 0 : i32
    %c0_i32_1 = arith.constant 0 : i32
    return %c0_i32, %c0_i32_0 : i32, i32
  }
  func.func @transform_5(%arg0: i32, %arg1: i32) -> (i32, i32) {
    %c0_i32 = arith.constant 0 : i32
    %c0_i32_0 = arith.constant 0 : i32
    %c0_i32_1 = arith.constant 0 : i32
    return %c0_i32, %c0_i32_0 : i32, i32
  }
  func.func @transform_6(%arg0: i32, %arg1: i32) -> (i32, i32) {
    %c0_i32 = arith.constant 0 : i32
    %c0_i32_0 = arith.constant 0 : i32
    %c0_i32_1 = arith.constant 0 : i32
    return %c0_i32, %c0_i32_0 : i32, i32
  }
  func.func @transform_7(%arg0: i32, %arg1: i32) -> (i32, i32, i32, i32, i32) {
    %c0_i32 = arith.constant 0 : i32
    %c0_i32_0 = arith.constant 0 : i32
    %c0_i32_1 = arith.constant 0 : i32
    %c0_i32_2 = arith.constant 0 : i32
    return %arg0, %c0_i32, %arg1, %c0_i32_0, %c0_i32_1 : i32, i32, i32, i32, i32
  }
}

</mosaic_0001>

<bundles_post_ra>
// kernel: tpu_custom_call.1
= control target key start
LH: loop header
LB: loop body
LE: loop exit
PB: predicated region body
PF: predicated region fallthrough
CT: control target
= control target key end

     0   :  { %s2106_s24 = smov 0   ;;  %s2108_s25 = smov 0   ;;  %s2525_s0 = inlined_call_operand.vmem [shape: f32[2,8,4,3,10], index: 0, kind: input, shape index: {}]   ;;  %s2526_s1 = inlined_call_operand.vmem [shape: f32[10,128], index: 1, kind: input, shape index: {}]   ;;  %s2527_s2 = inlined_call_operand.vmem [shape: f32[128,10], index: 2, kind: input, shape index: {}]   ;;  %s2528_s3 = inlined_call_operand.vmem [shape: f32[2,8], index: 3, kind: input, shape index: {}]   ;;  %s2529_s4 = inlined_call_operand.vmem [shape: f32[2,1], index: 4, kind: input, shape index: {}]   ;;  %s2530_s5 = inlined_call_operand.vmem [shape: f32[8,2], index: 5, kind: input, shape index: {}]   ;;  %s2531_s6 = inlined_call_operand.vmem [shape: f32[8,1], index: 6, kind: input, shape index: {}]   ;;  %s2532_s7 = inlined_call_operand.vmem [shape: f32[2,8,4,3,10], index: 7, kind: output, shape index: {}]  }
   0x1   :  { %s2110_s26 = smov 0   ;;  %s2112_s27 = smov 0  }
   0x2   :  { %s2114_s28 = smov 0   ;;  %s2116_s29 = smov 0  }
   0x3   :  { %s2118_s30 = smov 0  }
   0x4 LB: > { %s26_s8 = sadd.s32 1, %s2050_s28  ;;  %s29_s9 = sadd.s32 1, %s2054_s29  ;;  %s2058_s30 = sphi %s2118_s30, %s17_s30   ;;  %s2054_s29 = sphi %s2116_s29, %s2539_s29   ;;  %s2050_s28 = sphi %s2114_s28, %s2538_s28   ;;  %s2046_s27 = sphi %s2112_s27, %s2537_s27   ;;  %s2042_s26 = sphi %s2110_s26, %s2536_s26   ;;  %s2038_s25 = sphi %s2108_s25, %s2535_s25   ;;  %s2034_s24 = sphi %s2106_s24, %s2534_s24  }
   0x5   : > { %p27_p0 = scmp.ge.s32.totalorder %s26_s8, 2  ;;  %s1656_s10 = sadd.s32 4294967295, %s2058_s30  }
   0x6   : > { %p45_p1 = scmp.ne.s32.totalorder %s2038_s25, %s2034_s24  ;;  %p46_p2 = scmp.eq.s32.totalorder %s2058_s30, 0 }
   0x7   : > { %s2541_s8 = smov (%p27_p0, %s26_s8), 0  ;;  %s2543_s9 = smov (!%p27_p0, %s29_s9), %s2054_s29 }
   0x8   : > { %p31_p3 = scmp.ge.s32.totalorder %s2543_s9, 2  ;;  %p203_p4 = scmp.eq.s32.totalorder %s1656_s10, 3 }
   0x9   : > { %s34_s11 = ssub.s32 %s2050_s28, %s2541_s8  ;;  %p47_p5 = por %p46_p2, %p45_p1 }
   0xa   : > { %s2545_s9 = smov (%p31_p3, %s2543_s9), 0  ;;  %p2154_p6 = por %p203_p4, %p45_p1 }
   0xb   : > { %s33_s13 = ssub.s32 %s2054_s29, %s2545_s9  ;;  %s38_s15 = sadd.s32 1, %s2038_s25 }
   0xc   : > { %s35_s14 = sor.u32 %s34_s11, %s33_s13  ;;  %p1659_p8 = scmp.ge.s32.totalorder %s2058_s30, 4 }
   0xd   : > { %p36_p7 = scmp.eq.s32.totalorder %s35_s14, 0 }
   0xe   : > { %243 = sbr.rel (%p1659_p8) target bundleno = 32 (0x20), region = 40 }
   0xf   : > { %s2162_s16 = scalar_select %p36_p7, %s2038_s25, %s38_s15  }
  0x15   : > { %246 = sbr.rel (!%p47_p5) target bundleno = 32 (0x20), region = 44  ;;  %s248_s17 = sand.u32 (%p47_p5), 1, %s2038_s25  }
  0x16   : > { %s1661_s18 = sshll.u32 (%p47_p5), %s2050_s28, 1  ;;  %s1660_s19 = sshll.u32 (%p47_p5), %s248_s17, 6 }
  0x17   : > { %s1662_s20 = sshll.u32 (%p47_p5), %s2054_s29, 5  ;;  %s250_s13 = scalar_lea.vmem (%p47_p5), [#allocation2], %s1660_s19 }
  0x18   : > { %s253_s21 = sadd.s32 (%p47_p5), %s1662_s20, %s1661_s18 }
  0x19   : > { %s1663_s22 = sshll.u32 (%p47_p5), %s253_s21, 2 }
  0x1a   : > { %s255_s11 = scalar_lea.vmem (%p47_p5), %s2525_s0, %s1663_s22 }
  0x1b   : > { %v271_v0 = vld [vmem:[%s255_s11] sm:$0xff] (%p47_p5)   ;;  %v275_v1 = vld [vmem:[%s255_s11 + $0x10] sm:$0xff] (%p47_p5)  }
  0x1c   : > { %v279_v2 = vld [vmem:[%s255_s11 + $0x20] sm:$0xff]   ;;  %272 = vst [vmem:[%s250_s13] sm:$0xff] %v271_v0   ;;  %276 = vst [vmem:[%s250_s13 + $0x8] sm:$0xff] %v275_v1   ;;  %v283_v3 = vld [vmem:[%s255_s11 + $0x30] sm:$0xff]  }
  0x1d   : > { %280 = vst [vmem:[%s250_s13 + $0x10] sm:$0xff] %v279_v2   ;;  %v287_v4 = vld [vmem:[%s255_s11 + $0x40] sm:$0xff]   ;;  %v291_v5 = vld [vmem:[%s255_s11 + $0x50] sm:$0xff]   ;;  %284 = vst [vmem:[%s250_s13 + $0x18] sm:$0xff] %v283_v3  }
  0x1e   : > { %288 = vst [vmem:[%s250_s13 + $0x20] sm:$0xff] %v287_v4   ;;  %292 = vst [vmem:[%s250_s13 + $0x28] sm:$0xff] %v291_v5   ;;  %v295_v6 = vld [vmem:[%s255_s11 + $0x60] sm:$0xff]   ;;  %v299_v7 = vld [vmem:[%s255_s11 + $0x70] sm:$0xff]  }
  0x1f   : > { %296 = vst [vmem:[%s250_s13 + $0x30] sm:$0xff] %v295_v6   ;;  %300 = vst [vmem:[%s250_s13 + $0x38] sm:$0xff] %v299_v7  }
  0x20 PF: > { %p1664_p9 = scmp.ge.s32.totalorder %s2058_s30, 1  ;;  %p356_p10 = scmp.lt.s32.totalorder %s2058_s30, 5 }
  0x22   : > { %p357_p11 = pnand %p1664_p9, %p356_p10 }
  0x23   : > { %v460_v8 = vld [vmem:[%s2526_s1] sm:$0xff] (!%p357_p11)  ;;  %v461_v9 = vld [vmem:[%s2526_s1 + $0x8] sm:$0x3] (!%p357_p11)  ;;  %vm487_vm0 = vcmask (!%p357_p11), 1041408   ;;  %v2060_v10 = vmov (!%p357_p11), 0.0|0.0   ;;  %vm2061_vm1 = vmmov (!%p357_p11), 1  }
  0x24   : > { %360 = sbr.rel (%p357_p11) target bundleno = 985 (0x3d9), region = 85  ;;  %1868 = vmatprep.subr.bf16.mxu0 (!%p357_p11), %v2060_v10  ;;  %1896 = vmatprep.subr.bf16.mxu1 (!%p357_p11), %v2060_v10  ;;  %v1869_v11 = vpack.c.bf16 (!%p357_p11), %v461_v9, %v460_v8  ;;  %vm1870_vm2 = vmpackc.low (!%p357_p11), %vm487_vm0, %vm2061_vm1  ;;  %v1003_v12 = vld [vmem:[%s2526_s1 + $0x8] sm:$0x3] (!%p357_p11)  ;;  %s363_s21 = sand.u32 (!%p357_p11), 1, %s2034_s24   ;;  %vm2062_vm3 = vmmov (!%p357_p11), 0   ;;  %v2063_v14 = vmov (!%p357_p11), 0.0  }
  0x25   : > { %v1897_v13 = vpack.c.bf16 (!%p357_p11), %v1003_v12, %v460_v8  ;;  %1768 = vmatprep.mubr.msk.f32.mxu0 (!%p357_p11), %vm2062_vm3, %v2063_v14  ;;  %1820 = vmatprep.mubr.msk.f32.mxu1 (!%p357_p11), %vm2062_vm3, %v2063_v14  ;;  %s2190_s22 = sshll.u32 (!%p357_p11), %s363_s21, 6  ;;  %vm403_vm4 = vcmask (!%p357_p11), 75776   ;;  %vm470_vm5 = vcmask (!%p357_p11), 1041409   ;;  %vm472_vm6 = vcmask (!%p357_p11), 1042434   ;;  %s1688_s24 = sshll.u32 (!%p357_p11), %s2042_s26, 1 }
  0x26   : > { %1871 = vmatpush3.bf16.msk.msra.mxu0 (!%p357_p11), %vm1870_vm2, %v1869_v11  ;;  %s2193_s23 = scalar_lea.vmem (!%p357_p11), [#allocation2], %s2190_s22  ;;  %vm474_vm7 = vcmask (!%p357_p11), 1043459   ;;  %s561_s10 = smul.u32 (!%p357_p11), 6, %s2042_s26  ;;  %vm476_vm8 = vcmask (!%p357_p11), 1044484   ;;  %vm478_vm9 = vcmask (!%p357_p11), 1045509   ;;  %vm480_vm10 = vcmask (!%p357_p11), 1046534  }
  0x27   : > { %1899 = vmatpush3.bf16.msk.msra.mxu1 (!%p357_p11), %vm1870_vm2, %v1897_v13  ;;  %v2196_v15 = vld [vmem:[%s2193_s23] sm:$0x7] (!%p357_p11)  ;;  %v2199_v16 = vld [vmem:[%s2193_s23 + $0x8] sm:$0x7] (!%p357_p11)  ;;  %v2202_v17 = vld [vmem:[%s2193_s23 + $0x10] sm:$0x7] (!%p357_p11)  ;;  %1771 = vmatprep.subr.mxu0 (!%p357_p11), %v2063_v14 }
  0x28   : > { %v2206_v18 = vld [vmem:[%s2193_s23 + $0x18] sm:$0x7] (!%p357_p11)  ;;  %v2209_v19 = vld [vmem:[%s2193_s23 + $0x20] sm:$0x7] (!%p357_p11)  ;;  %v2212_v20 = vld [vmem:[%s2193_s23 + $0x28] sm:$0x7] (!%p357_p11)  ;;  %1823 = vmatprep.subr.mxu1 (!%p357_p11), %v2063_v14 }
  0x29   : > { %v2216_v21 = vld [vmem:[%s2193_s23 + $0x30] sm:$0x7] (!%p357_p11)  ;;  %v404_v22 = vsel (!%p357_p11), %vm403_vm4, %v2196_v15, 0.0  ;;  %v411_v23 = vsel (!%p357_p11), %vm403_vm4, %v2199_v16, 0.0  ;;  %v2223_v24 = vld [vmem:[%s2193_s23 + $0x38] sm:$0x7] (!%p357_p11) }
  0x2a   : > { %v405_v25 = vrot.slane (!%p357_p11), %v404_v22, 4  ;;  %v412_v26 = vrot.slane (!%p357_p11), %v411_v23, 4  ;;  %v418_v27 = vsel (!%p357_p11), %vm403_vm4, %v2202_v17, 0.0  ;;  %v425_v28 = vsel (!%p357_p11), %vm403_vm4, %v2206_v18, 0.0  ;;  %s1095_s11 = sadd.s32 (!%p357_p11), 1, %s1688_s24  ;;  %s2241_s13 = ssub.s32 (!%p357_p11), 10, %s561_s10 }
  0x2b   : > { %v419_v29 = vrot.slane %v418_v27, 4  ;;  %v426_v30 = vrot.slane %v425_v28, 4  ;;  %v432_v31 = vsel %vm403_vm4, %v2209_v19, 0.0  ;;  %v439_v32 = vsel %vm403_vm4, %v2212_v20, 0.0  ;;  %s1096_s14 = smul.u32 3, %s1095_s11  ;;  %p563_p12 = scmp.gt.s32.totalorder %s2241_s13, 1 }
  0x2c   : > { %v406_v33 = vadd.f32 %v405_v25, %v404_v22  ;;  %v413_v34 = vadd.f32 %v412_v26, %v411_v23  ;;  %v433_v35 = vrot.slane %v432_v31, 4  ;;  %v440_v36 = vrot.slane %v439_v32, 4  ;;  %v2244_v5 = vld [vmem:[%s2193_s23 + $0x4] sm:$0x7]  ;;  %v2250_v11 = vld [vmem:[%s2193_s23 + $0xc] sm:$0x7] }
  0x2d   : > { %v420_v37 = vadd.f32 %v419_v29, %v418_v27  ;;  %v427_v38 = vadd.f32 %v426_v30, %v425_v28  ;;  %v446_v39 = vsel %vm403_vm4, %v2216_v21, 0.0  ;;  %v453_v40 = vsel %vm403_vm4, %v2223_v24, 0.0  ;;  %s2247_s15 = ssub.s32 10, %s1096_s14  ;;  %v2253_v12 = vld [vmem:[%s2193_s23 + $0x14] sm:$0x7]  ;;  %p1669_p13 = scmp.lt.s32.totalorder %s2241_s13, 3 }
  0x2e   : > { %v407_v41 = vrot.slane %v406_v33, 2  ;;  %v414_v42 = vrot.slane %v413_v34, 2  ;;  %v434_v43 = vadd.f32 %v433_v35, %v432_v31  ;;  %v441_v44 = vadd.f32 %v440_v36, %v439_v32  ;;  %v2257_v25 = vld [vmem:[%s2193_s23 + $0x1c] sm:$0x7]  ;;  %p1098_p0 = scmp.gt.s32.totalorder %s2247_s15, 1  ;;  %p1689_p1 = scmp.lt.s32.totalorder %s2247_s15, 3 }
  0x2f   : > { %v421_v45 = vrot.slane %v420_v37, 2  ;;  %v428_v46 = vrot.slane %v427_v38, 2  ;;  %v447_v47 = vrot.slane %v446_v39, 4  ;;  %v454_v48 = vrot.slane %v453_v40, 4  ;;  %v2266_v31 = vld [vmem:[%s2193_s23 + $0x24] sm:$0x7] }
  0x30   : > { %v408_v49 = vadd.f32 %v407_v41, %v406_v33  ;;  %v415_v50 = vadd.f32 %v414_v42, %v413_v34  ;;  %v435_v51 = vrot.slane %v434_v43, 2  ;;  %v442_v52 = vrot.slane %v441_v44, 2  ;;  %s564_s17 = scalar_select %p563_p12, %s2241_s13, 1  ;;  %v2281_v41 = vld [vmem:[%s2193_s23 + $0x34] sm:$0x7] }
  0x31   : > { %v422_v53 = vadd.f32 %v421_v45, %v420_v37  ;;  %v429_v54 = vadd.f32 %v428_v46, %v427_v38  ;;  %v448_v55 = vadd.f32 %v447_v47, %v446_v39  ;;  %v455_v56 = vadd.f32 %v454_v48, %v453_v40  ;;  %v2277_v38 = vld [vmem:[%s2193_s23 + $0x2c] sm:$0x7]  ;;  %s1099_s18 = scalar_select %p1098_p0, %s2247_s15, 1 }
  0x32   : > { %vm482_vm11 = vcmask 1047559   ;;  %v409_v57 = vrot.slane %v408_v49, 1  ;;  %v416_v58 = vrot.slane %v415_v50, 1  ;;  %v436_v59 = vadd.f32 %v435_v51, %v434_v43  ;;  %s2547_s17 = smov (!%p1669_p13, %s564_s17), 3  ;;  %s2433_s10 = scalar_lea.vmem [#allocation3], %s2190_s22 }
  0x33   : > { %v443_v60 = vadd.f32 %v442_v52, %v441_v44  ;;  %v423_v61 = vrot.slane %v422_v53, 1  ;;  %v430_v62 = vrot.slane %v429_v54, 1  ;;  %v449_v63 = vrot.slane %v448_v55, 2  ;;  %s2549_s18 = smov (!%p1689_p1, %s1099_s18), 3  ;;  %s567_s19 = scvt.s32.f32 %s2547_s17 }
  0x34   : > { %v456_v0 = vrot.slane %v455_v56, 2  ;;  %v410_v1 = vadd.f32 %v409_v57, %v408_v49  ;;  %v417_v2 = vadd.f32 %v416_v58, %v415_v50  ;;  %v437_v3 = vrot.slane %v436_v59, 1  ;;  %v2294_v50 = vld [vmem:[%s2193_s23 + $0x3c] sm:$0x7]  ;;  %s1102_s20 = scvt.s32.f32 %s2549_s18  ;;  %s1708_s22 = sshll.u32 (%p2154_p6), %s2046_s27, 5 }
  0x35   : > { %v444_v4 = vrot.slane %v443_v60, 1  ;;  %v424_v6 = vadd.f32 %v423_v61, %v422_v53  ;;  %v431_v7 = vadd.f32 %v430_v62, %v429_v54  ;;  %v450_v8 = vadd.f32 %v449_v63, %v448_v55  ;;  %s1480_s11 = sadd.s32 (%p2154_p6), %s1708_s22, %s1688_s24 }
  0x36   : > { %v457_v9 = vadd.f32 %v456_v0, %v455_v56  ;;  %v438_v13 = vadd.f32 %v437_v3, %v436_v59  ;;  %v471_v23 = vsel %vm470_vm5, %v417_v2, %v410_v1  ;;  %vm484_vm12 = vcmask 80896   ;;  %s1709_s12 = sshll.u32 (%p2154_p6), %s1480_s11, 2 }
  0x37   : > { %v445_v22 = vadd.f32 %v444_v4, %v443_v60  ;;  %v451_v26 = vrot.slane %v450_v8, 1  ;;  %v473_v28 = vsel %vm472_vm6, %v424_v6, %v471_v23  ;;  %v946_v29 = vsel %vm403_vm4, %v2244_v5, 0.0  ;;  %s1482_s15 = scalar_lea.vmem (%p2154_p6), %s2532_s7, %s1709_s12 }
  0x38   : > { %v458_v27 = vrot.slane %v457_v9, 1  ;;  %v475_v30 = vsel %vm474_vm7, %v431_v7, %v473_v28  ;;  %v947_v32 = vrot.slane %v946_v29, 4  ;;  %v953_v33 = vsel %vm403_vm4, %v2250_v11, 0.0 }
  0x39   : > { %v960_v34 = vsel %vm403_vm4, %v2253_v12, 0.0  ;;  %v452_v35 = vadd.f32 %v451_v26, %v450_v8  ;;  %v477_v37 = vsel %vm476_vm8, %v438_v13, %v475_v30  ;;  %v954_v39 = vrot.slane %v953_v33, 4 }
  0x3a   : > { %v459_v36 = vadd.f32 %v458_v27, %v457_v9  ;;  %v479_v40 = vsel %vm478_vm9, %v445_v22, %v477_v37  ;;  %v948_v42 = vadd.f32 %v947_v32, %v946_v29  ;;  %v961_v43 = vrot.slane %v960_v34, 4 }
  0x3b   : > { %v967_v44 = vsel %vm403_vm4, %v2257_v25, 0.0  ;;  %v481_v45 = vsel %vm480_vm10, %v452_v35, %v479_v40  ;;  %v955_v46 = vadd.f32 %v954_v39, %v953_v33  ;;  %v974_v48 = vsel %vm403_vm4, %v2266_v31, 0.0 }
  0x3c   : > { %v968_v47 = vrot.slane %v967_v44, 4  ;;  %v483_v49 = vsel %vm482_vm11, %v459_v36, %v481_v45  ;;  %v949_v51 = vrot.slane %v948_v42, 2  ;;  %v962_v52 = vadd.f32 %v961_v43, %v960_v34 }
  0x3d   : > { %v975_v53 = vrot.slane %v974_v48, 4  ;;  %1769 = vmatmul.mubr.msk.f32.vlgmr.msra.gmra.mrb[0].mxu0 %vm484_vm12, %v483_v49  ;;  %v956_v54 = vrot.slane %v955_v46, 2  ;;  %v981_v56 = vsel %vm403_vm4, %v2277_v38, 0.0  ;;  %v988_v57 = vsel %vm403_vm4, %v2281_v41, 0.0 }
  0x3e   : > { %v969_v55 = vadd.f32 %v968_v47, %v967_v44  ;;  %v950_v58 = vadd.f32 %v949_v51, %v948_v42  ;;  %v963_v59 = vrot.slane %v962_v52, 2  ;;  %v982_v61 = vrot.slane %v981_v56, 4  ;;  %1773 = vmatprep.mubr.msk.f32.mxu0 %vm2062_vm3, %v2063_v14 }
  0x3f   : > { %v976_v60 = vadd.f32 %v975_v53, %v974_v48  ;;  %v957_v62 = vadd.f32 %v956_v54, %v955_v46  ;;  %v989_v0 = vrot.slane %v988_v57, 4  ;;  %v995_v1 = vsel %vm403_vm4, %v2294_v50, 0.0 }
  0x40   : > { %v970_v63 = vrot.slane %v969_v55, 2  ;;  %v951_v2 = vrot.slane %v950_v58, 1  ;;  %v964_v3 = vadd.f32 %v963_v59, %v962_v52  ;;  %v983_v6 = vadd.f32 %v982_v61, %v981_v56  ;;  %v574_v61 = vld [vmem:[%s2529_s4] sm:$0x3] }
  0x41   : > { %v977_v4 = vrot.slane %v976_v60, 2  ;;  %v958_v7 = vrot.slane %v957_v62, 1  ;;  %v990_v9 = vadd.f32 %v989_v0, %v988_v57  ;;  %v996_v13 = vrot.slane %v995_v1, 4 }
  0x42   : > { %v971_v8 = vadd.f32 %v970_v63, %v969_v55  ;;  %v952_v22 = vadd.f32 %v951_v2, %v950_v58  ;;  %v965_v23 = vrot.slane %v964_v3, 1  ;;  %v984_v27 = vrot.slane %v983_v6, 2  ;;  %v1109_v63 = vld [vmem:[%s2529_s4] sm:$0x3] }
  0x43   : > { %v978_v26 = vadd.f32 %v977_v4, %v976_v60  ;;  %v959_v28 = vadd.f32 %v958_v7, %v957_v62  ;;  %v991_v30 = vrot.slane %v990_v9, 2  ;;  %v997_v32 = vadd.f32 %v996_v13, %v995_v1  ;;  %v573_v4 = vld [vmem:[%s2528_s3] sm:$0x3] }
  0x44   : > { %v972_v29 = vrot.slane %v971_v8, 1  ;;  %v966_v33 = vadd.f32 %v965_v23, %v964_v3  ;;  %v985_v35 = vadd.f32 %v984_v27, %v983_v6  ;;  %v568_v36 = vstv %s567_s19  ;;  %v1108_v13 = vld [vmem:[%s2528_s3] sm:$0x3] }
  0x45   : > { %v979_v34 = vrot.slane %v978_v26, 1  ;;  %v992_v39 = vadd.f32 %v991_v30, %v990_v9  ;;  %v998_v40 = vrot.slane %v997_v32, 2  ;;  %v1012_v42 = vsel %vm470_vm5, %v959_v28, %v952_v22  ;;  %v656_v22 = vld [vmem:[%s2531_s6] sm:$0xff]  ;;  %v746_v28 = vld [vmem:[%s2527_s2 + $0x8] sm:$0xff] }
  0x46   : > { %v973_v37 = vadd.f32 %v972_v29, %v971_v8  ;;  %v986_v44 = vrot.slane %v985_v35, 1  ;;  %v1013_v45 = vsel %vm472_vm6, %v966_v33, %v1012_v42  ;;  %1992 = vrcp.f32 %v568_v36  ;;  %v745_v27 = vld [vmem:[%s2527_s2] sm:$0xff]  ;;  %v747_v42 = vld [vmem:[%s2527_s2 + $0x10] sm:$0xff] }
  0x47   : > { %v980_v43 = vadd.f32 %v979_v34, %v978_v26  ;;  %v993_v46 = vrot.slane %v992_v39, 1  ;;  %v999_v47 = vadd.f32 %v998_v40, %v997_v32  ;;  %v1103_v49 = vstv %s1102_s20  ;;  %v655_v33 = vld [vmem:[%s2530_s5] sm:$0xff] }
  0x48   : > { %v1014_v48 = vsel %vm474_vm7, %v973_v37, %v1013_v45  ;;  %v987_v51 = vadd.f32 %v986_v44, %v985_v35  ;;  %1994 = vrcp.f32 %v1103_v49  ;;  %v2064_v62 = vmov 0   ;;  %v750_v45 = vld [vmem:[%s2527_s2 + $0x28] sm:$0xff] }
  0x49   : > { %v1015_v52 = vsel %vm476_vm8, %v980_v43, %v1014_v48  ;;  %v994_v53 = vadd.f32 %v993_v46, %v992_v39  ;;  %v1000_v54 = vrot.slane %v999_v47, 1  ;;  %1990 = vset.pattern.permute.xlu0 %v2064_v62  ;;  %1991 = vset.pattern.permute.xlu1 %v2064_v62  ;;  %vm580_vm13 = vcmask 64512   ;;  %v748_v43 = vld [vmem:[%s2527_s2 + $0x18] sm:$0xff] }
  0x4a   : > { %v1016_v55 = vsel %vm478_vm9, %v987_v51, %v1015_v52  ;;  %577 = vperm.xlu0 %1990, %v574_v61   ;;  %659 = vperm.xlu1 %1991, %v656_v22   ;;  %vm662_vm14 = vcmask 15360   ;;  %v1873_v34 = vpack.c.bf16 %v746_v28, %v745_v27  ;;  %v1876_v44 = vpack.c.bf16 %v748_v43, %v747_v42  ;;  %v752_v48 = vld [vmem:[%s2527_s2 + $0x38] sm:$0xff]  ;;  %v753_v51 = vld [vmem:[%s2527_s2 + $0x40] sm:$0xff]  ;;  %v754_v52 = vld [vmem:[%s2527_s2 + $0x48] sm:$0xff] }
  0x4b   : > { %v1001_v56 = vadd.f32 %v1000_v54, %v999_v47  ;;  %v1017_v57 = vsel %vm480_vm10, %v994_v53, %v1016_v55  ;;  %v751_v47 = vld [vmem:[%s2527_s2 + $0x30] sm:$0xff]  ;;  %v1885_v53 = vpack.c.bf16 %v754_v52, %v753_v51  ;;  %v756_v55 = vld [vmem:[%s2527_s2 + $0x58] sm:$0xff]  ;;  %v2065_v28 = vmov 1966171168  }
  0x4c   : > { %v1882_v49 = vpack.c.bf16 %v752_v48, %v751_v47  ;;  %v755_v54 = vld [vmem:[%s2527_s2 + $0x50] sm:$0xff]  ;;  %v760_v61 = vld [vmem:[%s2527_s2 + $0x78] sm:$0xff] }
  0x4d   : > { %v1018_v58 = vsel %vm482_vm11, %v1001_v56, %v1017_v57  ;;  %v1888_v56 = vpack.c.bf16 %v756_v55, %v755_v54  ;;  %v757_v57 = vld [vmem:[%s2527_s2 + $0x60] sm:$0xff] }
  0x4e   : > { %1821 = vmatmul.mubr.msk.f32.vlgmr.msra.gmra.mrb[0].mxu1 %vm484_vm12, %v1018_v58  ;;  %1112 = vperm.xlu0 %1990, %v1109_v63   ;;  %v758_v58 = vld [vmem:[%s2527_s2 + $0x68] sm:$0xff] }
  0x4f   : > { %1825 = vmatprep.mubr.msk.f32.mxu1 %vm2062_vm3, %v2063_v14  ;;  %1193 = vperm.xlu1 %1991, %v656_v22  }
  0x50   : > { %v1993_v59 = vpop.eup %1992 }
  0x51   : > { %1924 = vpush %v1993_v59  ;;  %v1891_v59 = vpack.c.bf16 %v758_v58, %v757_v57 }
  0x52   : > { %v1995_v60 = vpop.eup %1994 }
  0x53   : > { %1926 = vpush %v1995_v60  ;;  %v759_v60 = vld [vmem:[%s2527_s2 + $0x70] sm:$0xff] }
  0x54   : > { %v1894_v62 = vpack.c.bf16 %v760_v61, %v759_v60 }
  0x82   : > { %s1925_s13 = spop %1924 }
  0x83   : > { %v571_v0 = vstv %s1925_s13 }
  0x84   : > { %s1927_s17 = spop %1926 }
  0x85   : > { %v1106_v6 = vstv %s1927_s17 }
  0xc9   : > { %v578_v23 = vpop.permute.xlu0 %577  ;;  %v660_v63 = vpop.permute.xlu1 %659 }
  0xcd   : > { %v1113_v35 = vpop.permute.xlu0 %1112 }
 0x110   : > { %v557_v1 = vpop.f32.mrb[0].mxu0 }
 0x111   : > { %v572_v2 = vmul.f32 %v571_v0, %v557_v1  ;;  %v1770_v3 = vpop.f32.mrb[1].mxu0 }
 0x113   : > { %1772 = vmatpush3.msra.mxu0 %v572_v2 }
 0x114   : > { %1774 = vmatmul.mubr.msk.f32.vlgmr.msra.gmra.mrb[2].mxu0 %vm580_vm13, %v573_v4  ;;  %1776 = vmatprep.subr.mxu0 %v2063_v14 }
 0x115   : > { %1778 = vmatprep.mubr.msk.f32.mxu0 %vm2062_vm3, %v2063_v14 }
 0x121   : > { %v1090_v7 = vpop.f32.mrb[0].mxu1 }
 0x122   : > { %v1107_v8 = vmul.f32 %v1106_v6, %v1090_v7  ;;  %v1822_v9 = vpop.f32.mrb[1].mxu1  ;;  %v1194_v7 = vpop.permute.xlu1 %1193 }
 0x124   : > { %1824 = vmatpush3.msra.mxu1 %v1107_v8 }
 0x125   : > { %1826 = vmatmul.mubr.msk.f32.vlgmr.msra.gmra.mrb[2].mxu1 %vm580_vm13, %v1108_v13  ;;  %1828 = vmatprep.subr.mxu1 %v2063_v14 }
 0x126   : > { %1830 = vmatprep.mubr.msk.f32.mxu1 %vm2062_vm3, %v2063_v14 }
 0x1e7   : > { %v650_v26 = vpop.f32.mrb[2].mxu0 }
 0x1e8   : > { %v651_v29 = vadd.f32 %v650_v26, %v578_v23  ;;  %v1775_v30 = vpop.f32.mrb[3].mxu0 }
 0x1e9   : > { %v836_v30 = vlaneseq }
 0x1ea   : > { %v654_v32 = vmax.f32 %v651_v29, 0.0  ;;  %v834_v29 = vunpack.c.l.s4 %v2065_v28 }
 0x1ec   : > { %1777 = vmatpush3.msk.msra.mxu0 %vm487_vm0, %v654_v32  ;;  %v835_v32 = vunpack.c.0.s8 %v834_v29 }
 0x1ed   : > { %1779 = vmatmul.mubr.msk.f32.vlgmr.msra.gmra.mrb[4].mxu0 %vm662_vm14, %v655_v33  ;;  %1872 = vmatprep.subr.bf16.mxu0 %v2060_v10 }
 0x1ee   : > { %1874 = vmatpush3.bf16.msra.mxu0 %v1873_v34  ;;  %1813 = vmatprep.mubr.msk.f32.mxu0 %vm2062_vm3, %v2063_v14 }
 0x1ef   : > { %1875 = vmatprep.subr.bf16.mxu0 %v2060_v10 }
 0x1f2   : > { %1877 = vmatpush3.bf16.msra.mxu0 %v1876_v44 }
 0x1f3   : > { %1878 = vmatprep.subr.bf16.mxu0 %v2060_v10 }
 0x1f8   : > { %v1184_v36 = vpop.f32.mrb[2].mxu1 }
 0x1f9   : > { %v1185_v37 = vadd.f32 %v1184_v36, %v1113_v35  ;;  %v1827_v39 = vpop.f32.mrb[3].mxu1 }
 0x1fb   : > { %v1188_v40 = vmax.f32 %v1185_v37, 0.0 }
 0x1fd   : > { %1829 = vmatpush3.msk.msra.mxu1 %vm487_vm0, %v1188_v40 }
 0x1fe   : > { %1831 = vmatmul.mubr.msk.f32.vlgmr.msra.gmra.mrb[4].mxu1 %vm662_vm14, %v655_v33  ;;  %1900 = vmatprep.subr.bf16.mxu1 %v2060_v10  ;;  %v837_v33 = vshrl.u32 %v836_v30, 7 }
 0x1ff   : > { %1902 = vmatpush3.bf16.msra.mxu1 %v1873_v34  ;;  %1865 = vmatprep.mubr.msk.f32.mxu1 %vm2062_vm3, %v2063_v14  ;;  %v749_v14 = vld [vmem:[%s2527_s2 + $0x20] sm:$0xff] }
 0x200   : > { %1903 = vmatprep.subr.bf16.mxu1 %v2060_v10  ;;  %v1879_v46 = vpack.c.bf16 %v750_v45, %v749_v14  ;;  %v838_v34 = vsub.s32 %v835_v32, %v837_v33  ;;  %v2419_v40 = vsub.s32 0, %v837_v33 }
 0x202   : > { %1880 = vmatpush3.bf16.msra.mxu0 %v1879_v46 }
 0x203   : > { %1905 = vmatpush3.bf16.msra.mxu1 %v1876_v44  ;;  %1881 = vmatprep.subr.bf16.mxu0 %v2060_v10 }
 0x204   : > { %1906 = vmatprep.subr.bf16.mxu1 %v2060_v10 }
 0x206   : > { %1883 = vmatpush3.bf16.msra.mxu0 %v1882_v49 }
 0x207   : > { %1908 = vmatpush3.bf16.msra.mxu1 %v1879_v46  ;;  %1884 = vmatprep.subr.bf16.mxu0 %v2060_v10 }
 0x208   : > { %1909 = vmatprep.subr.bf16.mxu1 %v2060_v10 }
 0x20a   : > { %1886 = vmatpush3.bf16.msra.mxu0 %v1885_v53 }
 0x20b   : > { %1911 = vmatpush3.bf16.msra.mxu1 %v1882_v49  ;;  %1887 = vmatprep.subr.bf16.mxu0 %v2060_v10 }
 0x20c   : > { %1912 = vmatprep.subr.bf16.mxu1 %v2060_v10 }
 0x20e   : > { %1889 = vmatpush3.bf16.msra.mxu0 %v1888_v56 }
 0x20f   : > { %1914 = vmatpush3.bf16.msra.mxu1 %v1885_v53  ;;  %1890 = vmatprep.subr.bf16.mxu0 %v2060_v10 }
 0x210   : > { %1915 = vmatprep.subr.bf16.mxu1 %v2060_v10 }
 0x212   : > { %1892 = vmatpush3.bf16.msra.mxu0 %v1891_v59 }
 0x213   : > { %1917 = vmatpush3.bf16.msra.mxu1 %v1888_v56  ;;  %1893 = vmatprep.subr.bf16.mxu0 %v2060_v10 }
 0x214   : > { %1918 = vmatprep.subr.bf16.mxu1 %v2060_v10 }
 0x216   : > { %1895 = vmatpush3.bf16.msra.mxu0 %v1894_v62 }
 0x217   : > { %1920 = vmatpush3.bf16.msra.mxu1 %v1891_v59 }
 0x218   : > { %1921 = vmatprep.subr.bf16.mxu1 %v2060_v10 }
 0x21b   : > { %1923 = vmatpush3.bf16.msra.mxu1 %v1894_v62 }
 0x2c0   : > { %v735_v0 = vpop.f32.mrb[4].mxu0 }
 0x2c1   : > { %v736_v1 = vadd.f32 %v735_v0, %v660_v63  ;;  %v1780_v2 = vpop.f32.mrb[5].mxu0 }
 0x2c3   : > { %v1677_v3 = vmul.f32 -1.442695, %v736_v1 }
 0x2c5   : > { %1996 = vpow2.f32 %v1677_v3 }
 0x2cf   : > { %v1997_v4 = vpop.eup %1996 }
 0x2d0   : > { %v742_v6 = vadd.f32 1.0, %v1997_v4 }
 0x2d1   : > { %v1268_v8 = vpop.f32.mrb[4].mxu1 }
 0x2d2   : > { %1998 = vrcp.f32 %v742_v6  ;;  %v1269_v9 = vadd.f32 %v1268_v8, %v1194_v7  ;;  %v1832_v13 = vpop.f32.mrb[5].mxu1 }
 0x2d4   : > { %v1697_v22 = vmul.f32 -1.442695, %v1269_v9 }
 0x2d6   : > { %2000 = vpow2.f32 %v1697_v22 }
 0x2dc   : > { %v1999_v23 = vpop.eup %1998 }
 0x2dd   : > { %1814 = vmatmul.mubr.f32.vlgmr.msra.gmra.mrb[6].mxu0 %v1999_v23 }
 0x2e0   : > { %v2001_v10 = vpop.eup %2000 }
 0x2e1   : > { %v1275_v26 = vadd.f32 1.0, %v2001_v10 }
 0x2e3   : > { %2002 = vrcp.f32 %v1275_v26 }
 0x2ed   : > { %v2003_v27 = vpop.eup %2002 }
 0x2ee   : > { %1866 = vmatmul.mubr.f32.vlgmr.msra.gmra.mrb[6].mxu1 %v2003_v27 }
 0x3b0   : > { %v827_v35 = vpop.f32.mrb[6].mxu0 }
 0x3b1   : > { %v832_v36 = vcombine.high %v827_v35, %v827_v35  ;;  %v839_v37 = vrot.slane %v827_v35, %v838_v34  ;;  %v1815_v39 = vpop.f32.mrb[7].mxu0 }
 0x3b3   : > { %v846_v42 = vrot.slane %v832_v36, %v838_v34  ;;  %v847_v43 = vcombine.high %v839_v37, %v839_v37  ;;  %v855_v44 = vrot.slane %v839_v37, %v838_v34 }
 0x3b5   : > { %v848_v14 = vcombine.high %v846_v42, %v846_v42  ;;  %v862_v45 = vrot.slane %v846_v42, %v838_v34  ;;  %v869_v46 = vrot.slane %v847_v43, %v838_v34  ;;  %v877_v47 = vcombine.high %v855_v44, %v855_v44 }
 0x3b6   : > { %v884_v48 = vrot.slane %v855_v44, %v2419_v40 }
 0x3b7   : > { %v876_v49 = vrot.slane %v848_v14, %v838_v34  ;;  %v878_v51 = vcombine.high %v862_v45, %v862_v45  ;;  %v879_v52 = vcombine.high %v869_v46, %v869_v46  ;;  %v888_v53 = vrot.slane %v869_v46, %v2419_v40 }
 0x3b8   : > { %v892_v54 = vrot.slane %v877_v47, %v2419_v40  ;;  %v900_v55 = vrot.slane %v862_v45, %v2419_v40  ;;  %v921_v56 = vmul.f32 %v884_v48, %v2196_v15 }
 0x3b9   : > { %v880_v57 = vcombine.high %v876_v49, %v876_v49  ;;  %v896_v58 = vrot.slane %v879_v52, %v2419_v40  ;;  %v904_v59 = vrot.slane %v876_v49, %v2419_v40  ;;  %v908_v60 = vrot.slane %v878_v51, %v2419_v40 }
 0x3ba   : > { %v922_v61 = vmul.f32 %v888_v53, %v2199_v16  ;;  %v923_v62 = vmul.f32 %v892_v54, %v2202_v17  ;;  %v925_v63 = vmul.f32 %v900_v55, %v2209_v19  ;;  %929 = vst.msk [vmem:[%s2433_s10] sm:$0x7] %vm403_vm4, %v921_v56 }
 0x3bb   : > { %v912_v15 = vrot.slane %v880_v57, %v2419_v40  ;;  %v924_v16 = vmul.f32 %v896_v58, %v2206_v18  ;;  %v926_v17 = vmul.f32 %v904_v59, %v2212_v20  ;;  %v927_v19 = vmul.f32 %v908_v60, %v2216_v21 }
 0x3bc   : > { %930 = vst.msk [vmem:[%s2433_s10 + $0x8] sm:$0x7] %vm403_vm4, %v922_v61  ;;  %931 = vst.msk [vmem:[%s2433_s10 + $0x10] sm:$0x7] %vm403_vm4, %v923_v62 }
 0x3bd   : > { %933 = vst.msk [vmem:[%s2433_s10 + $0x20] sm:$0x7] %vm403_vm4, %v925_v63  ;;  %v928_v0 = vmul.f32 %v912_v15, %v2223_v24  ;;  %932 = vst.msk [vmem:[%s2433_s10 + $0x18] sm:$0x7] %vm403_vm4, %v924_v16 }
 0x3be   : > { %934 = vst.msk [vmem:[%s2433_s10 + $0x28] sm:$0x7] %vm403_vm4, %v926_v17  ;;  %935 = vst.msk [vmem:[%s2433_s10 + $0x30] sm:$0x7] %vm403_vm4, %v927_v19 }
 0x3bf   : > { %936 = vst.msk [vmem:[%s2433_s10 + $0x38] sm:$0x7] %vm403_vm4, %v928_v0 }
 0x3c1   : > { %v1360_v18 = vpop.f32.mrb[6].mxu1 }
 0x3c2   : > { %v1365_v20 = vcombine.high %v1360_v18, %v1360_v18  ;;  %v1372_v1 = vrot.slane %v1360_v18, %v838_v34  ;;  %v1867_v21 = vpop.f32.mrb[7].mxu1 }
 0x3c4   : > { %v1379_v2 = vrot.slane %v1365_v20, %v838_v34  ;;  %v1380_v3 = vcombine.high %v1372_v1, %v1372_v1  ;;  %v1388_v4 = vrot.slane %v1372_v1, %v838_v34 }
 0x3c6   : > { %v1381_v6 = vcombine.high %v1379_v2, %v1379_v2  ;;  %v1395_v7 = vrot.slane %v1379_v2, %v838_v34  ;;  %v1402_v8 = vrot.slane %v1380_v3, %v838_v34  ;;  %v1410_v9 = vcombine.high %v1388_v4, %v1388_v4 }
 0x3c7   : > { %v1417_v24 = vrot.slane %v1388_v4, %v2419_v40 }
 0x3c8   : > { %v1409_v13 = vrot.slane %v1381_v6, %v838_v34  ;;  %v1411_v22 = vcombine.high %v1395_v7, %v1395_v7  ;;  %v1412_v23 = vcombine.high %v1402_v8, %v1402_v8  ;;  %v1421_v10 = vrot.slane %v1402_v8, %v2419_v40 }
 0x3c9   : > { %v1425_v26 = vrot.slane %v1410_v9, %v2419_v40  ;;  %v1433_v27 = vrot.slane %v1395_v7, %v2419_v40  ;;  %v1454_v28 = vmul.f32 %v2244_v5, %v1417_v24 }
 0x3ca   : > { %v1413_v29 = vcombine.high %v1409_v13, %v1409_v13  ;;  %v1429_v30 = vrot.slane %v1412_v23, %v2419_v40  ;;  %v1437_v32 = vrot.slane %v1409_v13, %v2419_v40  ;;  %v1441_v33 = vrot.slane %v1411_v22, %v2419_v40  ;;  %1477 = sbr.rel (!%p2154_p6) target bundleno = 985 (0x3d9), region = 93 }
 0x3cb   : > { %v1455_v34 = vmul.f32 %v2250_v11, %v1421_v10  ;;  %v1456_v35 = vmul.f32 %v2253_v12, %v1425_v26  ;;  %v1458_v36 = vmul.f32 %v2266_v31, %v1433_v27  ;;  %1698 = vst.msk [vmem:[%s2433_s10 + $0x4] sm:$0x7] %vm403_vm4, %v1454_v28 }
 0x3cc   : > { %v1445_v5 = vrot.slane %v1413_v29, %v2419_v40  ;;  %v1457_v37 = vmul.f32 %v2257_v25, %v1429_v30  ;;  %v1459_v39 = vmul.f32 %v2277_v38, %v1437_v32  ;;  %v1460_v42 = vmul.f32 %v2281_v41, %v1441_v33 }
 0x3cd   : > { %1699 = vst.msk [vmem:[%s2433_s10 + $0xc] sm:$0x7] %vm403_vm4, %v1455_v34  ;;  %1700 = vst.msk [vmem:[%s2433_s10 + $0x14] sm:$0x7] %vm403_vm4, %v1456_v35 }
 0x3ce   : > { %1702 = vst.msk [vmem:[%s2433_s10 + $0x24] sm:$0x7] %vm403_vm4, %v1458_v36  ;;  %v1461_v11 = vmul.f32 %v2294_v50, %v1445_v5  ;;  %1701 = vst.msk [vmem:[%s2433_s10 + $0x1c] sm:$0x7] %vm403_vm4, %v1457_v37 }
 0x3cf   : > { %1703 = vst.msk [vmem:[%s2433_s10 + $0x2c] sm:$0x7] %vm403_vm4, %v1459_v39  ;;  %1704 = vst.msk [vmem:[%s2433_s10 + $0x34] sm:$0x7] %vm403_vm4, %v1460_v42 }
 0x3d0   : > { %1705 = vst.msk [vmem:[%s2433_s10 + $0x3c] sm:$0x7] %vm403_vm4, %v1461_v11 }
 0x3d2   : > { %v1498_v12 = vld [vmem:[%s2433_s10] sm:$0xff]  }
 0x3d3   : > { %1499 = vst [vmem:[%s1482_s15] sm:$0xff] %v1498_v12  }
 0x3d4   : > { %v1502_v25 = vld [vmem:[%s2433_s10 + $0x8] sm:$0xff]   ;;  %v1506_v31 = vld [vmem:[%s2433_s10 + $0x10] sm:$0xff]  }
 0x3d5   : > { %v1510_v38 = vld [vmem:[%s2433_s10 + $0x18] sm:$0xff]   ;;  %v1514_v41 = vld [vmem:[%s2433_s10 + $0x20] sm:$0xff]   ;;  %1503 = vst [vmem:[%s1482_s15 + $0x10] sm:$0xff] %v1502_v25   ;;  %1507 = vst [vmem:[%s1482_s15 + $0x20] sm:$0xff] %v1506_v31  }
 0x3d6   : > { %v1518_v50 = vld [vmem:[%s2433_s10 + $0x28] sm:$0xff]   ;;  %v1522_v40 = vld [vmem:[%s2433_s10 + $0x30] sm:$0xff]   ;;  %1511 = vst [vmem:[%s1482_s15 + $0x30] sm:$0xff] %v1510_v38   ;;  %1515 = vst [vmem:[%s1482_s15 + $0x40] sm:$0xff] %v1514_v41  }
 0x3d7   : > { %v1526_v43 = vld [vmem:[%s2433_s10 + $0x38] sm:$0xff]   ;;  %1519 = vst [vmem:[%s1482_s15 + $0x50] sm:$0xff] %v1518_v50   ;;  %1523 = vst [vmem:[%s1482_s15 + $0x60] sm:$0xff] %v1522_v40  }
 0x3d8   : > { %1527 = vst [vmem:[%s1482_s15 + $0x70] sm:$0xff] %v1526_v43  }
 0x3d9 PF: > { %s17_s30 = sadd.s32 1, %s2058_s30   ;;  %s2534_s24 = smov %s2038_s25 }
 0x3da   : > { %p14_p2 = scmp.ge.s32.totalorder %s17_s30, 6   ;;  %s2535_s25 = smov %s2162_s16 }
 0x3db   : > { %s2536_s26 = smov %s2050_s28  ;;  %s2537_s27 = smov %s2054_s29 }
 0x3dc   : > { %s2538_s28 = smov %s2541_s8  ;;  %s2539_s29 = smov %s2545_s9 }
 0x3dd   :  { %16 = sbr.rel (!%p14_p2) target bundleno = 4 (0x4), region = 167 }

// kernel: tpu_custom_call.1
= control target key start
LH: loop header
LB: loop body
LE: loop exit
PB: predicated region body
PF: predicated region fallthrough
CT: control target
= control target key end

     0   :  { %s2106_s24 = smov 0   ;;  %s2108_s25 = smov 0   ;;  %s2525_s0 = inlined_call_operand.vmem [shape: f32[2,8,4,3,10], index: 0, kind: input, shape index: {}]   ;;  %s2526_s1 = inlined_call_operand.vmem [shape: f32[10,128], index: 1, kind: input, shape index: {}]   ;;  %s2527_s2 = inlined_call_operand.vmem [shape: f32[128,10], index: 2, kind: input, shape index: {}]   ;;  %s2528_s3 = inlined_call_operand.vmem [shape: f32[2,8], index: 3, kind: input, shape index: {}]   ;;  %s2529_s4 = inlined_call_operand.vmem [shape: f32[2,1], index: 4, kind: input, shape index: {}]   ;;  %s2530_s5 = inlined_call_operand.vmem [shape: f32[8,2], index: 5, kind: input, shape index: {}]   ;;  %s2531_s6 = inlined_call_operand.vmem [shape: f32[8,1], index: 6, kind: input, shape index: {}]   ;;  %s2532_s7 = inlined_call_operand.vmem [shape: f32[2,8,4,3,10], index: 7, kind: output, shape index: {}]  }
   0x1   :  { %s2110_s26 = smov 0   ;;  %s2112_s27 = smov 0  }
   0x2   :  { %s2114_s28 = smov 0   ;;  %s2116_s29 = smov 0  }
   0x3   :  { %s2118_s30 = smov 0  }
   0x4 LB: > { %s26_s8 = sadd.s32 1, %s2050_s28  ;;  %s29_s9 = sadd.s32 1, %s2054_s29  ;;  %s2058_s30 = sphi %s2118_s30, %s17_s30   ;;  %s2054_s29 = sphi %s2116_s29, %s2539_s29   ;;  %s2050_s28 = sphi %s2114_s28, %s2538_s28   ;;  %s2046_s27 = sphi %s2112_s27, %s2537_s27   ;;  %s2042_s26 = sphi %s2110_s26, %s2536_s26   ;;  %s2038_s25 = sphi %s2108_s25, %s2535_s25   ;;  %s2034_s24 = sphi %s2106_s24, %s2534_s24  }
   0x5   : > { %p27_p0 = scmp.ge.s32.totalorder %s26_s8, 2  ;;  %s1656_s10 = sadd.s32 4294967295, %s2058_s30  }
   0x6   : > { %p45_p1 = scmp.ne.s32.totalorder %s2038_s25, %s2034_s24  ;;  %p46_p2 = scmp.eq.s32.totalorder %s2058_s30, 0 }
   0x7   : > { %s2541_s8 = smov (%p27_p0, %s26_s8), 0  ;;  %s2543_s9 = smov (!%p27_p0, %s29_s9), %s2054_s29 }
   0x8   : > { %p31_p3 = scmp.ge.s32.totalorder %s2543_s9, 2  ;;  %p203_p4 = scmp.eq.s32.totalorder %s1656_s10, 3 }
   0x9   : > { %s34_s11 = ssub.s32 %s2050_s28, %s2541_s8  ;;  %p47_p5 = por %p46_p2, %p45_p1 }
   0xa   : > { %s2545_s9 = smov (%p31_p3, %s2543_s9), 0  ;;  %p2154_p6 = por %p203_p4, %p45_p1 }
   0xb   : > { %s33_s13 = ssub.s32 %s2054_s29, %s2545_s9  ;;  %s38_s15 = sadd.s32 1, %s2038_s25 }
   0xc   : > { %s35_s14 = sor.u32 %s34_s11, %s33_s13  ;;  %p1659_p8 = scmp.ge.s32.totalorder %s2058_s30, 4 }
   0xd   : > { %p36_p7 = scmp.eq.s32.totalorder %s35_s14, 0 }
   0xe   : > { %243 = sbr.rel (%p1659_p8) target bundleno = 32 (0x20), region = 40 }
   0xf   : > { %s2162_s16 = scalar_select %p36_p7, %s2038_s25, %s38_s15  }
  0x15   : > { %246 = sbr.rel (!%p47_p5) target bundleno = 32 (0x20), region = 44  ;;  %s248_s17 = sand.u32 (%p47_p5), 1, %s2038_s25  }
  0x16   : > { %s1661_s18 = sshll.u32 (%p47_p5), %s2050_s28, 1  ;;  %s1660_s19 = sshll.u32 (%p47_p5), %s248_s17, 6 }
  0x17   : > { %s1662_s20 = sshll.u32 (%p47_p5), %s2054_s29, 5  ;;  %s250_s13 = scalar_lea.vmem (%p47_p5), [#allocation2], %s1660_s19 }
  0x18   : > { %s253_s21 = sadd.s32 (%p47_p5), %s1662_s20, %s1661_s18 }
  0x19   : > { %s1663_s22 = sshll.u32 (%p47_p5), %s253_s21, 2 }
  0x1a   : > { %s255_s11 = scalar_lea.vmem (%p47_p5), %s2525_s0, %s1663_s22 }
  0x1b   : > { %v271_v0 = vld [vmem:[%s255_s11] sm:$0xff] (%p47_p5)   ;;  %v275_v1 = vld [vmem:[%s255_s11 + $0x10] sm:$0xff] (%p47_p5)  }
  0x1c   : > { %v279_v2 = vld [vmem:[%s255_s11 + $0x20] sm:$0xff]   ;;  %272 = vst [vmem:[%s250_s13] sm:$0xff] %v271_v0   ;;  %276 = vst [vmem:[%s250_s13 + $0x8] sm:$0xff] %v275_v1   ;;  %v283_v3 = vld [vmem:[%s255_s11 + $0x30] sm:$0xff]  }
  0x1d   : > { %280 = vst [vmem:[%s250_s13 + $0x10] sm:$0xff] %v279_v2   ;;  %v287_v4 = vld [vmem:[%s255_s11 + $0x40] sm:$0xff]   ;;  %v291_v5 = vld [vmem:[%s255_s11 + $0x50] sm:$0xff]   ;;  %284 = vst [vmem:[%s250_s13 + $0x18] sm:$0xff] %v283_v3  }
  0x1e   : > { %288 = vst [vmem:[%s250_s13 + $0x20] sm:$0xff] %v287_v4   ;;  %292 = vst [vmem:[%s250_s13 + $0x28] sm:$0xff] %v291_v5   ;;  %v295_v6 = vld [vmem:[%s255_s11 + $0x60] sm:$0xff]   ;;  %v299_v7 = vld [vmem:[%s255_s11 + $0x70] sm:$0xff]  }
  0x1f   : > { %296 = vst [vmem:[%s250_s13 + $0x30] sm:$0xff] %v295_v6   ;;  %300 = vst [vmem:[%s250_s13 + $0x38] sm:$0xff] %v299_v7  }
  0x20 PF: > { %p1664_p9 = scmp.ge.s32.totalorder %s2058_s30, 1  ;;  %p356_p10 = scmp.lt.s32.totalorder %s2058_s30, 5 }
  0x22   : > { %p357_p11 = pnand %p1664_p9, %p356_p10 }
  0x23   : > { %v460_v8 = vld [vmem:[%s2526_s1] sm:$0xff] (!%p357_p11)  ;;  %v461_v9 = vld [vmem:[%s2526_s1 + $0x8] sm:$0x3] (!%p357_p11)  ;;  %vm487_vm0 = vcmask (!%p357_p11), 1041408   ;;  %v2060_v10 = vmov (!%p357_p11), 0.0|0.0   ;;  %vm2061_vm1 = vmmov (!%p357_p11), 1  }
  0x24   : > { %360 = sbr.rel (%p357_p11) target bundleno = 985 (0x3d9), region = 85  ;;  %1868 = vmatprep.subr.bf16.mxu0 (!%p357_p11), %v2060_v10  ;;  %1896 = vmatprep.subr.bf16.mxu1 (!%p357_p11), %v2060_v10  ;;  %v1869_v11 = vpack.c.bf16 (!%p357_p11), %v461_v9, %v460_v8  ;;  %vm1870_vm2 = vmpackc.low (!%p357_p11), %vm487_vm0, %vm2061_vm1  ;;  %v1003_v12 = vld [vmem:[%s2526_s1 + $0x8] sm:$0x3] (!%p357_p11)  ;;  %s363_s21 = sand.u32 (!%p357_p11), 1, %s2034_s24   ;;  %vm2062_vm3 = vmmov (!%p357_p11), 0   ;;  %v2063_v14 = vmov (!%p357_p11), 0.0  }
  0x25   : > { %v1897_v13 = vpack.c.bf16 (!%p357_p11), %v1003_v12, %v460_v8  ;;  %1768 = vmatprep.mubr.msk.f32.mxu0 (!%p357_p11), %vm2062_vm3, %v2063_v14  ;;  %1820 = vmatprep.mubr.msk.f32.mxu1 (!%p357_p11), %vm2062_vm3, %v2063_v14  ;;  %s2190_s22 = sshll.u32 (!%p357_p11), %s363_s21, 6  ;;  %vm403_vm4 = vcmask (!%p357_p11), 75776   ;;  %vm470_vm5 = vcmask (!%p357_p11), 1041409   ;;  %vm472_vm6 = vcmask (!%p357_p11), 1042434   ;;  %s1688_s24 = sshll.u32 (!%p357_p11), %s2042_s26, 1 }
  0x26   : > { %1871 = vmatpush3.bf16.msk.msra.mxu0 (!%p357_p11), %vm1870_vm2, %v1869_v11  ;;  %s2193_s23 = scalar_lea.vmem (!%p357_p11), [#allocation2], %s2190_s22  ;;  %vm474_vm7 = vcmask (!%p357_p11), 1043459   ;;  %s561_s10 = smul.u32 (!%p357_p11), 6, %s2042_s26  ;;  %vm476_vm8 = vcmask (!%p357_p11), 1044484   ;;  %vm478_vm9 = vcmask (!%p357_p11), 1045509   ;;  %vm480_vm10 = vcmask (!%p357_p11), 1046534  }
  0x27   : > { %1899 = vmatpush3.bf16.msk.msra.mxu1 (!%p357_p11), %vm1870_vm2, %v1897_v13  ;;  %v2196_v15 = vld [vmem:[%s2193_s23] sm:$0x7] (!%p357_p11)  ;;  %v2199_v16 = vld [vmem:[%s2193_s23 + $0x8] sm:$0x7] (!%p357_p11)  ;;  %v2202_v17 = vld [vmem:[%s2193_s23 + $0x10] sm:$0x7] (!%p357_p11)  ;;  %1771 = vmatprep.subr.mxu0 (!%p357_p11), %v2063_v14 }
  0x28   : > { %v2206_v18 = vld [vmem:[%s2193_s23 + $0x18] sm:$0x7] (!%p357_p11)  ;;  %v2209_v19 = vld [vmem:[%s2193_s23 + $0x20] sm:$0x7] (!%p357_p11)  ;;  %v2212_v20 = vld [vmem:[%s2193_s23 + $0x28] sm:$0x7] (!%p357_p11)  ;;  %1823 = vmatprep.subr.mxu1 (!%p357_p11), %v2063_v14 }
  0x29   : > { %v2216_v21 = vld [vmem:[%s2193_s23 + $0x30] sm:$0x7] (!%p357_p11)  ;;  %v404_v22 = vsel (!%p357_p11), %vm403_vm4, %v2196_v15, 0.0  ;;  %v411_v23 = vsel (!%p357_p11), %vm403_vm4, %v2199_v16, 0.0  ;;  %v2223_v24 = vld [vmem:[%s2193_s23 + $0x38] sm:$0x7] (!%p357_p11) }
  0x2a   : > { %v405_v25 = vrot.slane (!%p357_p11), %v404_v22, 4  ;;  %v412_v26 = vrot.slane (!%p357_p11), %v411_v23, 4  ;;  %v418_v27 = vsel (!%p357_p11), %vm403_vm4, %v2202_v17, 0.0  ;;  %v425_v28 = vsel (!%p357_p11), %vm403_vm4, %v2206_v18, 0.0  ;;  %s1095_s11 = sadd.s32 (!%p357_p11), 1, %s1688_s24  ;;  %s2241_s13 = ssub.s32 (!%p357_p11), 10, %s561_s10 }
  0x2b   : > { %v419_v29 = vrot.slane %v418_v27, 4  ;;  %v426_v30 = vrot.slane %v425_v28, 4  ;;  %v432_v31 = vsel %vm403_vm4, %v2209_v19, 0.0  ;;  %v439_v32 = vsel %vm403_vm4, %v2212_v20, 0.0  ;;  %s1096_s14 = smul.u32 3, %s1095_s11  ;;  %p563_p12 = scmp.gt.s32.totalorder %s2241_s13, 1 }
  0x2c   : > { %v406_v33 = vadd.f32 %v405_v25, %v404_v22  ;;  %v413_v34 = vadd.f32 %v412_v26, %v411_v23  ;;  %v433_v35 = vrot.slane %v432_v31, 4  ;;  %v440_v36 = vrot.slane %v439_v32, 4  ;;  %v2244_v5 = vld [vmem:[%s2193_s23 + $0x4] sm:$0x7]  ;;  %v2250_v11 = vld [vmem:[%s2193_s23 + $0xc] sm:$0x7] }
  0x2d   : > { %v420_v37 = vadd.f32 %v419_v29, %v418_v27  ;;  %v427_v38 = vadd.f32 %v426_v30, %v425_v28  ;;  %v446_v39 = vsel %vm403_vm4, %v2216_v21, 0.0  ;;  %v453_v40 = vsel %vm403_vm4, %v2223_v24, 0.0  ;;  %s2247_s15 = ssub.s32 10, %s1096_s14  ;;  %v2253_v12 = vld [vmem:[%s2193_s23 + $0x14] sm:$0x7]  ;;  %p1669_p13 = scmp.lt.s32.totalorder %s2241_s13, 3 }
  0x2e   : > { %v407_v41 = vrot.slane %v406_v33, 2  ;;  %v414_v42 = vrot.slane %v413_v34, 2  ;;  %v434_v43 = vadd.f32 %v433_v35, %v432_v31  ;;  %v441_v44 = vadd.f32 %v440_v36, %v439_v32  ;;  %v2257_v25 = vld [vmem:[%s2193_s23 + $0x1c] sm:$0x7]  ;;  %p1098_p0 = scmp.gt.s32.totalorder %s2247_s15, 1  ;;  %p1689_p1 = scmp.lt.s32.totalorder %s2247_s15, 3 }
  0x2f   : > { %v421_v45 = vrot.slane %v420_v37, 2  ;;  %v428_v46 = vrot.slane %v427_v38, 2  ;;  %v447_v47 = vrot.slane %v446_v39, 4  ;;  %v454_v48 = vrot.slane %v453_v40, 4  ;;  %v2266_v31 = vld [vmem:[%s2193_s23 + $0x24] sm:$0x7] }
  0x30   : > { %v408_v49 = vadd.f32 %v407_v41, %v406_v33  ;;  %v415_v50 = vadd.f32 %v414_v42, %v413_v34  ;;  %v435_v51 = vrot.slane %v434_v43, 2  ;;  %v442_v52 = vrot.slane %v441_v44, 2  ;;  %s564_s17 = scalar_select %p563_p12, %s2241_s13, 1  ;;  %v2281_v41 = vld [vmem:[%s2193_s23 + $0x34] sm:$0x7] }
  0x31   : > { %v422_v53 = vadd.f32 %v421_v45, %v420_v37  ;;  %v429_v54 = vadd.f32 %v428_v46, %v427_v38  ;;  %v448_v55 = vadd.f32 %v447_v47, %v446_v39  ;;  %v455_v56 = vadd.f32 %v454_v48, %v453_v40  ;;  %v2277_v38 = vld [vmem:[%s2193_s23 + $0x2c] sm:$0x7]  ;;  %s1099_s18 = scalar_select %p1098_p0, %s2247_s15, 1 }
  0x32   : > { %vm482_vm11 = vcmask 1047559   ;;  %v409_v57 = vrot.slane %v408_v49, 1  ;;  %v416_v58 = vrot.slane %v415_v50, 1  ;;  %v436_v59 = vadd.f32 %v435_v51, %v434_v43  ;;  %s2547_s17 = smov (!%p1669_p13, %s564_s17), 3  ;;  %s2433_s10 = scalar_lea.vmem [#allocation3], %s2190_s22 }
  0x33   : > { %v443_v60 = vadd.f32 %v442_v52, %v441_v44  ;;  %v423_v61 = vrot.slane %v422_v53, 1  ;;  %v430_v62 = vrot.slane %v429_v54, 1  ;;  %v449_v63 = vrot.slane %v448_v55, 2  ;;  %s2549_s18 = smov (!%p1689_p1, %s1099_s18), 3  ;;  %s567_s19 = scvt.s32.f32 %s2547_s17 }
  0x34   : > { %v456_v0 = vrot.slane %v455_v56, 2  ;;  %v410_v1 = vadd.f32 %v409_v57, %v408_v49  ;;  %v417_v2 = vadd.f32 %v416_v58, %v415_v50  ;;  %v437_v3 = vrot.slane %v436_v59, 1  ;;  %v2294_v50 = vld [vmem:[%s2193_s23 + $0x3c] sm:$0x7]  ;;  %s1102_s20 = scvt.s32.f32 %s2549_s18  ;;  %s1708_s22 = sshll.u32 (%p2154_p6), %s2046_s27, 5 }
  0x35   : > { %v444_v4 = vrot.slane %v443_v60, 1  ;;  %v424_v6 = vadd.f32 %v423_v61, %v422_v53  ;;  %v431_v7 = vadd.f32 %v430_v62, %v429_v54  ;;  %v450_v8 = vadd.f32 %v449_v63, %v448_v55  ;;  %s1480_s11 = sadd.s32 (%p2154_p6), %s1708_s22, %s1688_s24 }
  0x36   : > { %v457_v9 = vadd.f32 %v456_v0, %v455_v56  ;;  %v438_v13 = vadd.f32 %v437_v3, %v436_v59  ;;  %v471_v23 = vsel %vm470_vm5, %v417_v2, %v410_v1  ;;  %vm484_vm12 = vcmask 80896   ;;  %s1709_s12 = sshll.u32 (%p2154_p6), %s1480_s11, 2 }
  0x37   : > { %v445_v22 = vadd.f32 %v444_v4, %v443_v60  ;;  %v451_v26 = vrot.slane %v450_v8, 1  ;;  %v473_v28 = vsel %vm472_vm6, %v424_v6, %v471_v23  ;;  %v946_v29 = vsel %vm403_vm4, %v2244_v5, 0.0  ;;  %s1482_s15 = scalar_lea.vmem (%p2154_p6), %s2532_s7, %s1709_s12 }
  0x38   : > { %v458_v27 = vrot.slane %v457_v9, 1  ;;  %v475_v30 = vsel %vm474_vm7, %v431_v7, %v473_v28  ;;  %v947_v32 = vrot.slane %v946_v29, 4  ;;  %v953_v33 = vsel %vm403_vm4, %v2250_v11, 0.0 }
  0x39   : > { %v960_v34 = vsel %vm403_vm4, %v2253_v12, 0.0  ;;  %v452_v35 = vadd.f32 %v451_v26, %v450_v8  ;;  %v477_v37 = vsel %vm476_vm8, %v438_v13, %v475_v30  ;;  %v954_v39 = vrot.slane %v953_v33, 4 }
  0x3a   : > { %v459_v36 = vadd.f32 %v458_v27, %v457_v9  ;;  %v479_v40 = vsel %vm478_vm9, %v445_v22, %v477_v37  ;;  %v948_v42 = vadd.f32 %v947_v32, %v946_v29  ;;  %v961_v43 = vrot.slane %v960_v34, 4 }
  0x3b   : > { %v967_v44 = vsel %vm403_vm4, %v2257_v25, 0.0  ;;  %v481_v45 = vsel %vm480_vm10, %v452_v35, %v479_v40  ;;  %v955_v46 = vadd.f32 %v954_v39, %v953_v33  ;;  %v974_v48 = vsel %vm403_vm4, %v2266_v31, 0.0 }
  0x3c   : > { %v968_v47 = vrot.slane %v967_v44, 4  ;;  %v483_v49 = vsel %vm482_vm11, %v459_v36, %v481_v45  ;;  %v949_v51 = vrot.slane %v948_v42, 2  ;;  %v962_v52 = vadd.f32 %v961_v43, %v960_v34 }
  0x3d   : > { %v975_v53 = vrot.slane %v974_v48, 4  ;;  %1769 = vmatmul.mubr.msk.f32.vlgmr.msra.gmra.mrb[0].mxu0 %vm484_vm12, %v483_v49  ;;  %v956_v54 = vrot.slane %v955_v46, 2  ;;  %v981_v56 = vsel %vm403_vm4, %v2277_v38, 0.0  ;;  %v988_v57 = vsel %vm403_vm4, %v2281_v41, 0.0 }
  0x3e   : > { %v969_v55 = vadd.f32 %v968_v47, %v967_v44  ;;  %v950_v58 = vadd.f32 %v949_v51, %v948_v42  ;;  %v963_v59 = vrot.slane %v962_v52, 2  ;;  %v982_v61 = vrot.slane %v981_v56, 4  ;;  %1773 = vmatprep.mubr.msk.f32.mxu0 %vm2062_vm3, %v2063_v14 }
  0x3f   : > { %v976_v60 = vadd.f32 %v975_v53, %v974_v48  ;;  %v957_v62 = vadd.f32 %v956_v54, %v955_v46  ;;  %v989_v0 = vrot.slane %v988_v57, 4  ;;  %v995_v1 = vsel %vm403_vm4, %v2294_v50, 0.0 }
  0x40   : > { %v970_v63 = vrot.slane %v969_v55, 2  ;;  %v951_v2 = vrot.slane %v950_v58, 1  ;;  %v964_v3 = vadd.f32 %v963_v59, %v962_v52  ;;  %v983_v6 = vadd.f32 %v982_v61, %v981_v56  ;;  %v574_v61 = vld [vmem:[%s2529_s4] sm:$0x3] }
  0x41   : > { %v977_v4 = vrot.slane %v976_v60, 2  ;;  %v958_v7 = vrot.slane %v957_v62, 1  ;;  %v990_v9 = vadd.f32 %v989_v0, %v988_v57  ;;  %v996_v13 = vrot.slane %v995_v1, 4 }
  0x42   : > { %v971_v8 = vadd.f32 %v970_v63, %v969_v55  ;;  %v952_v22 = vadd.f32 %v951_v2, %v950_v58  ;;  %v965_v23 = vrot.slane %v964_v3, 1  ;;  %v984_v27 = vrot.slane %v983_v6, 2  ;;  %v1109_v63 = vld [vmem:[%s2529_s4] sm:$0x3] }
  0x43   : > { %v978_v26 = vadd.f32 %v977_v4, %v976_v60  ;;  %v959_v28 = vadd.f32 %v958_v7, %v957_v62  ;;  %v991_v30 = vrot.slane %v990_v9, 2  ;;  %v997_v32 = vadd.f32 %v996_v13, %v995_v1  ;;  %v573_v4 = vld [vmem:[%s2528_s3] sm:$0x3] }
  0x44   : > { %v972_v29 = vrot.slane %v971_v8, 1  ;;  %v966_v33 = vadd.f32 %v965_v23, %v964_v3  ;;  %v985_v35 = vadd.f32 %v984_v27, %v983_v6  ;;  %v568_v36 = vstv %s567_s19  ;;  %v1108_v13 = vld [vmem:[%s2528_s3] sm:$0x3] }
  0x45   : > { %v979_v34 = vrot.slane %v978_v26, 1  ;;  %v992_v39 = vadd.f32 %v991_v30, %v990_v9  ;;  %v998_v40 = vrot.slane %v997_v32, 2  ;;  %v1012_v42 = vsel %vm470_vm5, %v959_v28, %v952_v22  ;;  %v656_v22 = vld [vmem:[%s2531_s6] sm:$0xff]  ;;  %v746_v28 = vld [vmem:[%s2527_s2 + $0x8] sm:$0xff] }
  0x46   : > { %v973_v37 = vadd.f32 %v972_v29, %v971_v8  ;;  %v986_v44 = vrot.slane %v985_v35, 1  ;;  %v1013_v45 = vsel %vm472_vm6, %v966_v33, %v1012_v42  ;;  %1992 = vrcp.f32 %v568_v36  ;;  %v745_v27 = vld [vmem:[%s2527_s2] sm:$0xff]  ;;  %v747_v42 = vld [vmem:[%s2527_s2 + $0x10] sm:$0xff] }
  0x47   : > { %v980_v43 = vadd.f32 %v979_v34, %v978_v26  ;;  %v993_v46 = vrot.slane %v992_v39, 1  ;;  %v999_v47 = vadd.f32 %v998_v40, %v997_v32  ;;  %v1103_v49 = vstv %s1102_s20  ;;  %v655_v33 = vld [vmem:[%s2530_s5] sm:$0xff] }
  0x48   : > { %v1014_v48 = vsel %vm474_vm7, %v973_v37, %v1013_v45  ;;  %v987_v51 = vadd.f32 %v986_v44, %v985_v35  ;;  %1994 = vrcp.f32 %v1103_v49  ;;  %v2064_v62 = vmov 0   ;;  %v750_v45 = vld [vmem:[%s2527_s2 + $0x28] sm:$0xff] }
  0x49   : > { %v1015_v52 = vsel %vm476_vm8, %v980_v43, %v1014_v48  ;;  %v994_v53 = vadd.f32 %v993_v46, %v992_v39  ;;  %v1000_v54 = vrot.slane %v999_v47, 1  ;;  %1990 = vset.pattern.permute.xlu0 %v2064_v62  ;;  %1991 = vset.pattern.permute.xlu1 %v2064_v62  ;;  %vm580_vm13 = vcmask 64512   ;;  %v748_v43 = vld [vmem:[%s2527_s2 + $0x18] sm:$0xff] }
  0x4a   : > { %v1016_v55 = vsel %vm478_vm9, %v987_v51, %v1015_v52  ;;  %577 = vperm.xlu0 %1990, %v574_v61   ;;  %659 = vperm.xlu1 %1991, %v656_v22   ;;  %vm662_vm14 = vcmask 15360   ;;  %v1873_v34 = vpack.c.bf16 %v746_v28, %v745_v27  ;;  %v1876_v44 = vpack.c.bf16 %v748_v43, %v747_v42  ;;  %v752_v48 = vld [vmem:[%s2527_s2 + $0x38] sm:$0xff]  ;;  %v753_v51 = vld [vmem:[%s2527_s2 + $0x40] sm:$0xff]  ;;  %v754_v52 = vld [vmem:[%s2527_s2 + $0x48] sm:$0xff] }
  0x4b   : > { %v1001_v56 = vadd.f32 %v1000_v54, %v999_v47  ;;  %v1017_v57 = vsel %vm480_vm10, %v994_v53, %v1016_v55  ;;  %v751_v47 = vld [vmem:[%s2527_s2 + $0x30] sm:$0xff]  ;;  %v1885_v53 = vpack.c.bf16 %v754_v52, %v753_v51  ;;  %v756_v55 = vld [vmem:[%s2527_s2 + $0x58] sm:$0xff]  ;;  %v2065_v28 = vmov 1966171168  }
  0x4c   : > { %v1882_v49 = vpack.c.bf16 %v752_v48, %v751_v47  ;;  %v755_v54 = vld [vmem:[%s2527_s2 + $0x50] sm:$0xff]  ;;  %v760_v61 = vld [vmem:[%s2527_s2 + $0x78] sm:$0xff] }
  0x4d   : > { %v1018_v58 = vsel %vm482_vm11, %v1001_v56, %v1017_v57  ;;  %v1888_v56 = vpack.c.bf16 %v756_v55, %v755_v54  ;;  %v757_v57 = vld [vmem:[%s2527_s2 + $0x60] sm:$0xff] }
  0x4e   : > { %1821 = vmatmul.mubr.msk.f32.vlgmr.msra.gmra.mrb[0].mxu1 %vm484_vm12, %v1018_v58  ;;  %1112 = vperm.xlu0 %1990, %v1109_v63   ;;  %v758_v58 = vld [vmem:[%s2527_s2 + $0x68] sm:$0xff] }
  0x4f   : > { %1825 = vmatprep.mubr.msk.f32.mxu1 %vm2062_vm3, %v2063_v14  ;;  %1193 = vperm.xlu1 %1991, %v656_v22  }
  0x50   : > { %v1993_v59 = vpop.eup %1992 }
  0x51   : > { %1924 = vpush %v1993_v59  ;;  %v1891_v59 = vpack.c.bf16 %v758_v58, %v757_v57 }
  0x52   : > { %v1995_v60 = vpop.eup %1994 }
  0x53   : > { %1926 = vpush %v1995_v60  ;;  %v759_v60 = vld [vmem:[%s2527_s2 + $0x70] sm:$0xff] }
  0x54   : > { %v1894_v62 = vpack.c.bf16 %v760_v61, %v759_v60 }
  0x82   : > { %s1925_s13 = spop %1924 }
  0x83   : > { %v571_v0 = vstv %s1925_s13 }
  0x84   : > { %s1927_s17 = spop %1926 }
  0x85   : > { %v1106_v6 = vstv %s1927_s17 }
  0xc9   : > { %v578_v23 = vpop.permute.xlu0 %577  ;;  %v660_v63 = vpop.permute.xlu1 %659 }
  0xcd   : > { %v1113_v35 = vpop.permute.xlu0 %1112 }
 0x110   : > { %v557_v1 = vpop.f32.mrb[0].mxu0 }
 0x111   : > { %v572_v2 = vmul.f32 %v571_v0, %v557_v1  ;;  %v1770_v3 = vpop.f32.mrb[1].mxu0 }
 0x113   : > { %1772 = vmatpush3.msra.mxu0 %v572_v2 }
 0x114   : > { %1774 = vmatmul.mubr.msk.f32.vlgmr.msra.gmra.mrb[2].mxu0 %vm580_vm13, %v573_v4  ;;  %1776 = vmatprep.subr.mxu0 %v2063_v14 }
 0x115   : > { %1778 = vmatprep.mubr.msk.f32.mxu0 %vm2062_vm3, %v2063_v14 }
 0x121   : > { %v1090_v7 = vpop.f32.mrb[0].mxu1 }
 0x122   : > { %v1107_v8 = vmul.f32 %v1106_v6, %v1090_v7  ;;  %v1822_v9 = vpop.f32.mrb[1].mxu1  ;;  %v1194_v7 = vpop.permute.xlu1 %1193 }
 0x124   : > { %1824 = vmatpush3.msra.mxu1 %v1107_v8 }
 0x125   : > { %1826 = vmatmul.mubr.msk.f32.vlgmr.msra.gmra.mrb[2].mxu1 %vm580_vm13, %v1108_v13  ;;  %1828 = vmatprep.subr.mxu1 %v2063_v14 }
 0x126   : > { %1830 = vmatprep.mubr.msk.f32.mxu1 %vm2062_vm3, %v2063_v14 }
 0x1e7   : > { %v650_v26 = vpop.f32.mrb[2].mxu0 }
 0x1e8   : > { %v651_v29 = vadd.f32 %v650_v26, %v578_v23  ;;  %v1775_v30 = vpop.f32.mrb[3].mxu0 }
 0x1e9   : > { %v836_v30 = vlaneseq }
 0x1ea   : > { %v654_v32 = vmax.f32 %v651_v29, 0.0  ;;  %v834_v29 = vunpack.c.l.s4 %v2065_v28 }
 0x1ec   : > { %1777 = vmatpush3.msk.msra.mxu0 %vm487_vm0, %v654_v32  ;;  %v835_v32 = vunpack.c.0.s8 %v834_v29 }
 0x1ed   : > { %1779 = vmatmul.mubr.msk.f32.vlgmr.msra.gmra.mrb[4].mxu0 %vm662_vm14, %v655_v33  ;;  %1872 = vmatprep.subr.bf16.mxu0 %v2060_v10 }
 0x1ee   : > { %1874 = vmatpush3.bf16.msra.mxu0 %v1873_v34  ;;  %1813 = vmatprep.mubr.msk.f32.mxu0 %vm2062_vm3, %v2063_v14 }
 0x1ef   : > { %1875 = vmatprep.subr.bf16.mxu0 %v2060_v10 }
 0x1f2   : > { %1877 = vmatpush3.bf16.msra.mxu0 %v1876_v44 }
 0x1f3   : > { %1878 = vmatprep.subr.bf16.mxu0 %v2060_v10 }
 0x1f8   : > { %v1184_v36 = vpop.f32.mrb[2].mxu1 }
 0x1f9   : > { %v1185_v37 = vadd.f32 %v1184_v36, %v1113_v35  ;;  %v1827_v39 = vpop.f32.mrb[3].mxu1 }
 0x1fb   : > { %v1188_v40 = vmax.f32 %v1185_v37, 0.0 }
 0x1fd   : > { %1829 = vmatpush3.msk.msra.mxu1 %vm487_vm0, %v1188_v40 }
 0x1fe   : > { %1831 = vmatmul.mubr.msk.f32.vlgmr.msra.gmra.mrb[4].mxu1 %vm662_vm14, %v655_v33  ;;  %1900 = vmatprep.subr.bf16.mxu1 %v2060_v10  ;;  %v837_v33 = vshrl.u32 %v836_v30, 7 }
 0x1ff   : > { %1902 = vmatpush3.bf16.msra.mxu1 %v1873_v34  ;;  %1865 = vmatprep.mubr.msk.f32.mxu1 %vm2062_vm3, %v2063_v14  ;;  %v749_v14 = vld [vmem:[%s2527_s2 + $0x20] sm:$0xff] }
 0x200   : > { %1903 = vmatprep.subr.bf16.mxu1 %v2060_v10  ;;  %v1879_v46 = vpack.c.bf16 %v750_v45, %v749_v14  ;;  %v838_v34 = vsub.s32 %v835_v32, %v837_v33  ;;  %v2419_v40 = vsub.s32 0, %v837_v33 }
 0x202   : > { %1880 = vmatpush3.bf16.msra.mxu0 %v1879_v46 }
 0x203   : > { %1905 = vmatpush3.bf16.msra.mxu1 %v1876_v44  ;;  %1881 = vmatprep.subr.bf16.mxu0 %v2060_v10 }
 0x204   : > { %1906 = vmatprep.subr.bf16.mxu1 %v2060_v10 }
 0x206   : > { %1883 = vmatpush3.bf16.msra.mxu0 %v1882_v49 }
 0x207   : > { %1908 = vmatpush3.bf16.msra.mxu1 %v1879_v46  ;;  %1884 = vmatprep.subr.bf16.mxu0 %v2060_v10 }
 0x208   : > { %1909 = vmatprep.subr.bf16.mxu1 %v2060_v10 }
 0x20a   : > { %1886 = vmatpush3.bf16.msra.mxu0 %v1885_v53 }
 0x20b   : > { %1911 = vmatpush3.bf16.msra.mxu1 %v1882_v49  ;;  %1887 = vmatprep.subr.bf16.mxu0 %v2060_v10 }
 0x20c   : > { %1912 = vmatprep.subr.bf16.mxu1 %v2060_v10 }
 0x20e   : > { %1889 = vmatpush3.bf16.msra.mxu0 %v1888_v56 }
 0x20f   : > { %1914 = vmatpush3.bf16.msra.mxu1 %v1885_v53  ;;  %1890 = vmatprep.subr.bf16.mxu0 %v2060_v10 }
 0x210   : > { %1915 = vmatprep.subr.bf16.mxu1 %v2060_v10 }
 0x212   : > { %1892 = vmatpush3.bf16.msra.mxu0 %v1891_v59 }
 0x213   : > { %1917 = vmatpush3.bf16.msra.mxu1 %v1888_v56  ;;  %1893 = vmatprep.subr.bf16.mxu0 %v2060_v10 }
 0x214   : > { %1918 = vmatprep.subr.bf16.mxu1 %v2060_v10 }
 0x216   : > { %1895 = vmatpush3.bf16.msra.mxu0 %v1894_v62 }
 0x217   : > { %1920 = vmatpush3.bf16.msra.mxu1 %v1891_v59 }
 0x218   : > { %1921 = vmatprep.subr.bf16.mxu1 %v2060_v10 }
 0x21b   : > { %1923 = vmatpush3.bf16.msra.mxu1 %v1894_v62 }
 0x2c0   : > { %v735_v0 = vpop.f32.mrb[4].mxu0 }
 0x2c1   : > { %v736_v1 = vadd.f32 %v735_v0, %v660_v63  ;;  %v1780_v2 = vpop.f32.mrb[5].mxu0 }
 0x2c3   : > { %v1677_v3 = vmul.f32 -1.442695, %v736_v1 }
 0x2c5   : > { %1996 = vpow2.f32 %v1677_v3 }
 0x2cf   : > { %v1997_v4 = vpop.eup %1996 }
 0x2d0   : > { %v742_v6 = vadd.f32 1.0, %v1997_v4 }
 0x2d1   : > { %v1268_v8 = vpop.f32.mrb[4].mxu1 }
 0x2d2   : > { %1998 = vrcp.f32 %v742_v6  ;;  %v1269_v9 = vadd.f32 %v1268_v8, %v1194_v7  ;;  %v1832_v13 = vpop.f32.mrb[5].mxu1 }
 0x2d4   : > { %v1697_v22 = vmul.f32 -1.442695, %v1269_v9 }
 0x2d6   : > { %2000 = vpow2.f32 %v1697_v22 }
 0x2dc   : > { %v1999_v23 = vpop.eup %1998 }
 0x2dd   : > { %1814 = vmatmul.mubr.f32.vlgmr.msra.gmra.mrb[6].mxu0 %v1999_v23 }
 0x2e0   : > { %v2001_v10 = vpop.eup %2000 }
 0x2e1   : > { %v1275_v26 = vadd.f32 1.0, %v2001_v10 }
 0x2e3   : > { %2002 = vrcp.f32 %v1275_v26 }
 0x2ed   : > { %v2003_v27 = vpop.eup %2002 }
 0x2ee   : > { %1866 = vmatmul.mubr.f32.vlgmr.msra.gmra.mrb[6].mxu1 %v2003_v27 }
 0x3b0   : > { %v827_v35 = vpop.f32.mrb[6].mxu0 }
 0x3b1   : > { %v832_v36 = vcombine.high %v827_v35, %v827_v35  ;;  %v839_v37 = vrot.slane %v827_v35, %v838_v34  ;;  %v1815_v39 = vpop.f32.mrb[7].mxu0 }
 0x3b3   : > { %v846_v42 = vrot.slane %v832_v36, %v838_v34  ;;  %v847_v43 = vcombine.high %v839_v37, %v839_v37  ;;  %v855_v44 = vrot.slane %v839_v37, %v838_v34 }
 0x3b5   : > { %v848_v14 = vcombine.high %v846_v42, %v846_v42  ;;  %v862_v45 = vrot.slane %v846_v42, %v838_v34  ;;  %v869_v46 = vrot.slane %v847_v43, %v838_v34  ;;  %v877_v47 = vcombine.high %v855_v44, %v855_v44 }
 0x3b6   : > { %v884_v48 = vrot.slane %v855_v44, %v2419_v40 }
 0x3b7   : > { %v876_v49 = vrot.slane %v848_v14, %v838_v34  ;;  %v878_v51 = vcombine.high %v862_v45, %v862_v45  ;;  %v879_v52 = vcombine.high %v869_v46, %v869_v46  ;;  %v888_v53 = vrot.slane %v869_v46, %v2419_v40 }
 0x3b8   : > { %v892_v54 = vrot.slane %v877_v47, %v2419_v40  ;;  %v900_v55 = vrot.slane %v862_v45, %v2419_v40  ;;  %v921_v56 = vmul.f32 %v884_v48, %v2196_v15 }
 0x3b9   : > { %v880_v57 = vcombine.high %v876_v49, %v876_v49  ;;  %v896_v58 = vrot.slane %v879_v52, %v2419_v40  ;;  %v904_v59 = vrot.slane %v876_v49, %v2419_v40  ;;  %v908_v60 = vrot.slane %v878_v51, %v2419_v40 }
 0x3ba   : > { %v922_v61 = vmul.f32 %v888_v53, %v2199_v16  ;;  %v923_v62 = vmul.f32 %v892_v54, %v2202_v17  ;;  %v925_v63 = vmul.f32 %v900_v55, %v2209_v19  ;;  %929 = vst.msk [vmem:[%s2433_s10] sm:$0x7] %vm403_vm4, %v921_v56 }
 0x3bb   : > { %v912_v15 = vrot.slane %v880_v57, %v2419_v40  ;;  %v924_v16 = vmul.f32 %v896_v58, %v2206_v18  ;;  %v926_v17 = vmul.f32 %v904_v59, %v2212_v20  ;;  %v927_v19 = vmul.f32 %v908_v60, %v2216_v21 }
 0x3bc   : > { %930 = vst.msk [vmem:[%s2433_s10 + $0x8] sm:$0x7] %vm403_vm4, %v922_v61  ;;  %931 = vst.msk [vmem:[%s2433_s10 + $0x10] sm:$0x7] %vm403_vm4, %v923_v62 }
 0x3bd   : > { %933 = vst.msk [vmem:[%s2433_s10 + $0x20] sm:$0x7] %vm403_vm4, %v925_v63  ;;  %v928_v0 = vmul.f32 %v912_v15, %v2223_v24  ;;  %932 = vst.msk [vmem:[%s2433_s10 + $0x18] sm:$0x7] %vm403_vm4, %v924_v16 }
 0x3be   : > { %934 = vst.msk [vmem:[%s2433_s10 + $0x28] sm:$0x7] %vm403_vm4, %v926_v17  ;;  %935 = vst.msk [vmem:[%s2433_s10 + $0x30] sm:$0x7] %vm403_vm4, %v927_v19 }
 0x3bf   : > { %936 = vst.msk [vmem:[%s2433_s10 + $0x38] sm:$0x7] %vm403_vm4, %v928_v0 }
 0x3c1   : > { %v1360_v18 = vpop.f32.mrb[6].mxu1 }
 0x3c2   : > { %v1365_v20 = vcombine.high %v1360_v18, %v1360_v18  ;;  %v1372_v1 = vrot.slane %v1360_v18, %v838_v34  ;;  %v1867_v21 = vpop.f32.mrb[7].mxu1 }
 0x3c4   : > { %v1379_v2 = vrot.slane %v1365_v20, %v838_v34  ;;  %v1380_v3 = vcombine.high %v1372_v1, %v1372_v1  ;;  %v1388_v4 = vrot.slane %v1372_v1, %v838_v34 }
 0x3c6   : > { %v1381_v6 = vcombine.high %v1379_v2, %v1379_v2  ;;  %v1395_v7 = vrot.slane %v1379_v2, %v838_v34  ;;  %v1402_v8 = vrot.slane %v1380_v3, %v838_v34  ;;  %v1410_v9 = vcombine.high %v1388_v4, %v1388_v4 }
 0x3c7   : > { %v1417_v24 = vrot.slane %v1388_v4, %v2419_v40 }
 0x3c8   : > { %v1409_v13 = vrot.slane %v1381_v6, %v838_v34  ;;  %v1411_v22 = vcombine.high %v1395_v7, %v1395_v7  ;;  %v1412_v23 = vcombine.high %v1402_v8, %v1402_v8  ;;  %v1421_v10 = vrot.slane %v1402_v8, %v2419_v40 }
 0x3c9   : > { %v1425_v26 = vrot.slane %v1410_v9, %v2419_v40  ;;  %v1433_v27 = vrot.slane %v1395_v7, %v2419_v40  ;;  %v1454_v28 = vmul.f32 %v2244_v5, %v1417_v24 }
 0x3ca   : > { %v1413_v29 = vcombine.high %v1409_v13, %v1409_v13  ;;  %v1429_v30 = vrot.slane %v1412_v23, %v2419_v40  ;;  %v1437_v32 = vrot.slane %v1409_v13, %v2419_v40  ;;  %v1441_v33 = vrot.slane %v1411_v22, %v2419_v40  ;;  %1477 = sbr.rel (!%p2154_p6) target bundleno = 985 (0x3d9), region = 93 }
 0x3cb   : > { %v1455_v34 = vmul.f32 %v2250_v11, %v1421_v10  ;;  %v1456_v35 = vmul.f32 %v2253_v12, %v1425_v26  ;;  %v1458_v36 = vmul.f32 %v2266_v31, %v1433_v27  ;;  %1698 = vst.msk [vmem:[%s2433_s10 + $0x4] sm:$0x7] %vm403_vm4, %v1454_v28 }
 0x3cc   : > { %v1445_v5 = vrot.slane %v1413_v29, %v2419_v40  ;;  %v1457_v37 = vmul.f32 %v2257_v25, %v1429_v30  ;;  %v1459_v39 = vmul.f32 %v2277_v38, %v1437_v32  ;;  %v1460_v42 = vmul.f32 %v2281_v41, %v1441_v33 }
 0x3cd   : > { %1699 = vst.msk [vmem:[%s2433_s10 + $0xc] sm:$0x7] %vm403_vm4, %v1455_v34  ;;  %1700 = vst.msk [vmem:[%s2433_s10 + $0x14] sm:$0x7] %vm403_vm4, %v1456_v35 }
 0x3ce   : > { %1702 = vst.msk [vmem:[%s2433_s10 + $0x24] sm:$0x7] %vm403_vm4, %v1458_v36  ;;  %v1461_v11 = vmul.f32 %v2294_v50, %v1445_v5  ;;  %1701 = vst.msk [vmem:[%s2433_s10 + $0x1c] sm:$0x7] %vm403_vm4, %v1457_v37 }
 0x3cf   : > { %1703 = vst.msk [vmem:[%s2433_s10 + $0x2c] sm:$0x7] %vm403_vm4, %v1459_v39  ;;  %1704 = vst.msk [vmem:[%s2433_s10 + $0x34] sm:$0x7] %vm403_vm4, %v1460_v42 }
 0x3d0   : > { %1705 = vst.msk [vmem:[%s2433_s10 + $0x3c] sm:$0x7] %vm403_vm4, %v1461_v11 }
 0x3d2   : > { %v1498_v12 = vld [vmem:[%s2433_s10] sm:$0xff]  }
 0x3d3   : > { %1499 = vst [vmem:[%s1482_s15] sm:$0xff] %v1498_v12  }
 0x3d4   : > { %v1502_v25 = vld [vmem:[%s2433_s10 + $0x8] sm:$0xff]   ;;  %v1506_v31 = vld [vmem:[%s2433_s10 + $0x10] sm:$0xff]  }
 0x3d5   : > { %v1510_v38 = vld [vmem:[%s2433_s10 + $0x18] sm:$0xff]   ;;  %v1514_v41 = vld [vmem:[%s2433_s10 + $0x20] sm:$0xff]   ;;  %1503 = vst [vmem:[%s1482_s15 + $0x10] sm:$0xff] %v1502_v25   ;;  %1507 = vst [vmem:[%s1482_s15 + $0x20] sm:$0xff] %v1506_v31  }
 0x3d6   : > { %v1518_v50 = vld [vmem:[%s2433_s10 + $0x28] sm:$0xff]   ;;  %v1522_v40 = vld [vmem:[%s2433_s10 + $0x30] sm:$0xff]   ;;  %1511 = vst [vmem:[%s1482_s15 + $0x30] sm:$0xff] %v1510_v38   ;;  %1515 = vst [vmem:[%s1482_s15 + $0x40] sm:$0xff] %v1514_v41  }
 0x3d7   : > { %v1526_v43 = vld [vmem:[%s2433_s10 + $0x38] sm:$0xff]   ;;  %1519 = vst [vmem:[%s1482_s15 + $0x50] sm:$0xff] %v1518_v50   ;;  %1523 = vst [vmem:[%s1482_s15 + $0x60] sm:$0xff] %v1522_v40  }
 0x3d8   : > { %1527 = vst [vmem:[%s1482_s15 + $0x70] sm:$0xff] %v1526_v43  }
 0x3d9 PF: > { %s17_s30 = sadd.s32 1, %s2058_s30   ;;  %s2534_s24 = smov %s2038_s25 }
 0x3da   : > { %p14_p2 = scmp.ge.s32.totalorder %s17_s30, 6   ;;  %s2535_s25 = smov %s2162_s16 }
 0x3db   : > { %s2536_s26 = smov %s2050_s28  ;;  %s2537_s27 = smov %s2054_s29 }
 0x3dc   : > { %s2538_s28 = smov %s2541_s8  ;;  %s2539_s29 = smov %s2545_s9 }
 0x3dd   :  { %16 = sbr.rel (!%p14_p2) target bundleno = 4 (0x4), region = 167 }

</bundles_post_ra>
